<compile_context>
chip_gen: v7x
topology: tpu7x:2x2x1
jax: 0.10.0
libtpu: 0.0.40
codegen_flags: <defaults>
</compile_context>

<pallas_src>
import functools

import jax
import jax.numpy as jnp
from jax import lax
from jax.experimental import pallas as pl
from jax.experimental.pallas import tpu as pltpu


_VMEM_LIMIT = 48 * 1024 * 1024    # safe scoped limit on v5e/v6e (128 MiB) and v7x (64 MiB)
_VMEM_BUDGET = 24 * 1024 * 1024   # target working set when picking tile_h


def _round_up(x, m):
    return (x + m - 1) // m * m


def _cdiv(a, b):
    return -(-a // b)


def _flatten_leading(xs, m):
    # Merge all leading dims of xs into (m, last).  When the second-minor extent is not
    # a multiple of the bf16 sublane quantum (16), bounce through f32 (quantum 8, always
    # satisfied by construction here) so the reshape is a pure re-tiling, not a packed
    # sublane relayout.
    if xs.dtype == jnp.bfloat16 and (xs.shape[-2] % 16) != 0:
        return xs.astype(jnp.float32).reshape(m, xs.shape[-1]).astype(jnp.bfloat16)
    return xs.reshape(m, xs.shape[-1])


def _vmem_estimate(tile_h, weff, cin, c_pad, pooled):
    lane_cin = _round_up(max(cin, 1), 128)          # activation lane padding in VMEM
    in_bytes = 2 * (tile_h + 2) * _round_up(weff + 2, 16) * lane_cin * 2   # double-buffered
    if pooled:
        m_out = (tile_h // 2) * (weff // 2)
        scratch = m_out * c_pad * 4
    else:
        m_out = tile_h * weff
        scratch = 0
    out_bytes = 2 * m_out * c_pad * 4
    w_bytes = 2 * 9 * _round_up(max(cin, 1), 16) * c_pad * 2
    return in_bytes + out_bytes + scratch + w_bytes


def _pick_tile_h(heff, weff, cin, c_pad, pooled, target_m=1024):
    # Target tile_m = tile_h * weff around 512-1024 rows (per-step overhead amortization),
    # clamped to the image height and to the VMEM budget (re-derived for v7x's 64 MiB).
    step = 2 if pooled else 1
    tile_h = max(step, min(heff, target_m // max(weff, 1)))
    tile_h -= tile_h % step
    tile_h = max(step, tile_h)
    while tile_h > step and _vmem_estimate(tile_h, weff, cin, c_pad, pooled) > _VMEM_BUDGET:
        tile_h -= step
    return tile_h


# ----------------------------- Pallas kernels ------------------------------ #

def _conv_pallas(xh, w9, tile_h, weff, c_pad):
    """xh: (NB, tile_h+2, weff+2, Cin) bf16 halo'd row blocks; w9: (9, Cin, C_pad) bf16.
    Returns (NB*tile_h*weff, C_pad) f32 conv output (rows ordered block-major)."""
    nb, thp2, wp2, cin = xh.shape
    m_blk = tile_h * weff

    def kernel(x_ref, w_ref, o_ref):
        # x_ref: (tile_h+2, weff+2, Cin) bf16; w_ref: (9, Cin, C_pad) bf16 (resident);
        # o_ref: (tile_h*weff, C_pad) f32 accumulated over the 9 taps in VMEM.
        for t in range(9):
            kh, kw = divmod(t, 3)
            xs = x_ref[kh:kh + tile_h, kw:kw + weff, :]          # static shifted view
            xs = _flatten_leading(xs, m_blk)                     # (tile_h*weff, Cin)
            p = jnp.dot(xs, w_ref[t], preferred_element_type=jnp.float32)
            if t == 0:
                o_ref[...] = p
            else:
                o_ref[...] += p

    return pl.pallas_call(
        kernel,
        out_shape=jax.ShapeDtypeStruct((nb * m_blk, c_pad), jnp.float32),
        grid_spec=pltpu.PrefetchScalarGridSpec(
            num_scalar_prefetch=0,
            grid=(nb,),
            in_specs=[
                pl.BlockSpec((None, thp2, wp2, cin), lambda i: (i, 0, 0, 0)),
                pl.BlockSpec((9, cin, c_pad), lambda i: (0, 0, 0)),   # weights resident
            ],
            out_specs=pl.BlockSpec((m_blk, c_pad), lambda i: (i, 0)),
        ),
        compiler_params=pltpu.CompilerParams(
            dimension_semantics=("parallel",),
            vmem_limit_bytes=_VMEM_LIMIT,
        ),
    )(xh, w9)


def _conv_pool_pallas(xs_split, w9, th2, w2b, c_pad):
    """xs_split: (NB, 2*(th2+1), 2*(w2b+1), Cin) bf16 parity-split halo'd row blocks.
    Returns (NB*th2*w2b, C_pad) f32 = 2x2-max-pooled conv output per block."""
    nb = xs_split.shape[0]
    rows, cols, cin = xs_split.shape[1], xs_split.shape[2], xs_split.shape[3]
    m_blk = th2 * w2b

    def kernel(x_ref, w_ref, o_ref, acc_ref):
        # x_ref: (2*(th2+1), 2*(w2b+1), Cin) bf16 parity-split tile.
        # For pool position (a, b) and tap (kh, kw) the needed stride-2 sample is a
        # unit-stride slice in this layout (no strided loads, no lane shuffles).
        for a in range(2):
            for b in range(2):
                for t in range(9):
                    kh, kw = divmod(t, 3)
                    rs = ((a + kh) % 2) * (th2 + 1) + (a + kh) // 2
                    cs = ((b + kw) % 2) * (w2b + 1) + (b + kw) // 2
                    xs = x_ref[rs:rs + th2, cs:cs + w2b, :]
                    xs = _flatten_leading(xs, m_blk)             # (th2*w2b, Cin)
                    p = jnp.dot(xs, w_ref[t], preferred_element_type=jnp.float32)
                    if t == 0:
                        acc_ref[...] = p
                    else:
                        acc_ref[...] += p
                if a == 0 and b == 0:
                    o_ref[...] = acc_ref[...]
                else:
                    o_ref[...] = jnp.maximum(o_ref[...], acc_ref[...])

    return pl.pallas_call(
        kernel,
        out_shape=jax.ShapeDtypeStruct((nb * m_blk, c_pad), jnp.float32),
        grid_spec=pltpu.PrefetchScalarGridSpec(
            num_scalar_prefetch=0,
            grid=(nb,),
            in_specs=[
                pl.BlockSpec((None, rows, cols, cin), lambda i: (i, 0, 0, 0)),
                pl.BlockSpec((9, cin, c_pad), lambda i: (0, 0, 0)),   # weights resident
            ],
            out_specs=pl.BlockSpec((m_blk, c_pad), lambda i: (i, 0)),
            scratch_shapes=[pltpu.VMEM((m_blk, c_pad), jnp.float32)],
        ),
        compiler_params=pltpu.CompilerParams(
            dimension_semantics=("parallel",),
            vmem_limit_bytes=_VMEM_LIMIT,
        ),
    )(xs_split, w9)


# ------------------------------ Module forward ----------------------------- #

def _halo_row_blocks(x_nhwc, tile_h, rows_tot, weff, h, w):
    """Pad NHWC input (conv pad 1 + alignment pad) and gather overlapping row blocks.
    Returns (N*RB, tile_h+2, weff+2, Cin) bf16 -- one fused XLA copy pass, ~1.1x input bytes."""
    n = x_nhwc.shape[0]
    xp = jnp.pad(x_nhwc, ((0, 0),
                          (1, rows_tot + 1 - h),
                          (1, weff + 1 - w),
                          (0, 0)))
    blocks = [xp[:, r0:r0 + tile_h + 2] for r0 in range(0, rows_tot, tile_h)]
    xh = jnp.stack(blocks, axis=1)
    return xh.reshape(n * len(blocks), tile_h + 2, weff + 2, x_nhwc.shape[-1])


@functools.partial(jax.jit, static_argnames=("downsample",))
def ffconv2d_forward(x_nchw, w_oihw, downsample=False):
    """Forward pass of FFconv2d.

    x_nchw: (N, Cin, H, W) f32, w_oihw: (Cout, Cin, 3, 3) f32 (no bias).
    Returns NCHW: (N, Cout, H, W) or (N, Cout, H//2, W//2) if downsample.
    """
    n, cin, h, w = x_nchw.shape
    cout = w_oihw.shape[0]
    c_pad = _round_up(max(cout, 1), 128)          # lane-dense output stores

    # weights: OIHW -> (9, Cin, C_pad) bf16, fully resident in VMEM
    w9 = jnp.transpose(w_oihw, (2, 3, 1, 0)).reshape(9, cin, cout)
    w9 = jnp.pad(w9, ((0, 0), (0, 0), (0, c_pad - cout))).astype(jnp.bfloat16)

    x_nhwc = jnp.transpose(x_nchw, (0, 2, 3, 1)).astype(jnp.bfloat16)

    if not downsample:
        weff = _round_up(max(w, 8), 16)
        heff = h
        tile_h = _pick_tile_h(heff, weff, cin, c_pad, pooled=False)
        rb = _cdiv(heff, tile_h)
        rows_tot = rb * tile_h
        xh = _halo_row_blocks(x_nhwc, tile_h, rows_tot, weff, h, w)
        y = _conv_pallas(xh, w9, tile_h, weff, c_pad)            # (nb*tile_h*weff, c_pad) f32
        y = y.reshape(n, rb * tile_h, weff, c_pad)[:, :h, :w, :cout]
        # TODO(synk): keep the network NHWC / fuse this crop+transpose into the consumer
        # to avoid the extra HBM pass (module API mandates NCHW here).
        return jnp.transpose(y, (0, 3, 1, 2))

    # downsample: conv + fused 2x2/stride-2 max-pool (tail rows/cols dropped like MaxPool2d)
    h2, w2 = h // 2, w // 2
    heff = 2 * h2
    weff = _round_up(max(w, 2), 16)
    w2b = weff // 2
    tile_h = _pick_tile_h(heff, weff, cin, c_pad, pooled=True)
    th2 = tile_h // 2
    rb = _cdiv(heff, tile_h)
    rows_tot = rb * tile_h
    xh = _halo_row_blocks(x_nhwc, tile_h, rows_tot, weff, h, w)
    # parity-split rows/cols so every (pool position, tap) sample is a unit-stride slice
    nb = xh.shape[0]
    xs = (xh.reshape(nb, th2 + 1, 2, w2b + 1, 2, cin)
            .transpose(0, 2, 1, 4, 3, 5)
            .reshape(nb, 2 * (th2 + 1), 2 * (w2b + 1), cin))
    y = _conv_pool_pallas(xs, w9, th2, w2b, c_pad)               # (nb*th2*w2b, c_pad) f32
    y = y.reshape(n, rb * th2, w2b, c_pad)[:, :h2, :w2, :cout]
    return jnp.transpose(y, (0, 3, 1, 2))


# ---------------------------------- main ----------------------------------- #

if __name__ == "__main__":
    key = jax.random.PRNGKey(0)
    k_x, k_w = jax.random.split(key)

    N, Cin, H, W = 2, 4, 16, 16
    Cout = 8

    x = jax.random.normal(k_x, (N, Cin, H, W), dtype=jnp.float32)
    # PyTorch Conv2d weight shape: OIHW, no bias
    conv_w = jax.random.normal(k_w, (Cout, Cin, 3, 3), dtype=jnp.float32) * (1.0 / (Cin * 9) ** 0.5)

    y_plain = ffconv2d_forward(x, conv_w, downsample=False)     # (2, 8, 16, 16)
    y_down = ffconv2d_forward(x, conv_w, downsample=True)       # (2, 8, 8, 8)
    jax.block_until_ready((y_plain, y_down))

    # reference check against XLA conv / reduce_window (f32)
    ref = lax.conv_general_dilated(
        x, conv_w, window_strides=(1, 1), padding="SAME",
        dimension_numbers=("NCHW", "OIHW", "NCHW"),
        precision=lax.Precision.HIGHEST)
    ref_down = lax.reduce_window(
        ref, -jnp.inf, lax.max, (1, 1, 2, 2), (1, 1, 2, 2), "VALID")

    assert y_plain.shape == (N, Cout, H, W)
    assert y_down.shape == (N, Cout, H // 2, W // 2)
    # bf16 matmul operands (f32 accumulate) -> loose tolerance vs the f32 reference
    assert jnp.allclose(y_plain, ref, atol=5e-2, rtol=5e-2)
    assert jnp.allclose(y_down, ref_down, atol=5e-2, rtol=5e-2)

    print("KERNEL_OK")
</pallas_src>

<mosaic_0001>
module attributes {stable_mosaic.version = 11 : i64} {
  func.func @kernel(%arg0: i32, %arg1: memref<1x18x18x4xbf16, #tpu.memory_space<vmem>>, %arg2: memref<9x4x128xbf16, #tpu.memory_space<vmem>>, %arg3: memref<256x128xf32, #tpu.memory_space<vmem>>) attributes {dimension_semantics = [#tpu.dimension_semantics<parallel>], iteration_bounds = array<i64: 2>, scalar_prefetch = 0 : i64, scratch_operands = 0 : i64, tpu.core_type = #tpu.core_type<tc>, window_params = [{transform_indices = @transform_0, window_bounds = array<i64: 1, 18, 18, 4>}, {pipeline_mode = #tpu.pipeline_mode<synchronous>, transform_indices = @transform_1, window_bounds = array<i64: 9, 4, 128>}, {transform_indices = @transform_2, window_bounds = array<i64: 256, 128>}]} {
    %c0 = arith.constant 0 : index
    %c0_0 = arith.constant 0 : index
    %c0_1 = arith.constant 0 : index
    %c0_2 = arith.constant 0 : index
    %0 = vector.load %arg1[%c0, %c0_0, %c0_1, %c0_2] : memref<1x18x18x4xbf16, #tpu.memory_space<vmem>>, vector<1x16x16x4xbf16>
    %1 = vector.shape_cast %0 : vector<1x16x16x4xbf16> to vector<16x16x4xbf16>
    %2 = vector.shape_cast %1 : vector<16x16x4xbf16> to vector<256x4xbf16>
    %c0_3 = arith.constant 0 : index
    %c0_4 = arith.constant 0 : index
    %c0_5 = arith.constant 0 : index
    %3 = vector.load %arg2[%c0_3, %c0_4, %c0_5] : memref<9x4x128xbf16, #tpu.memory_space<vmem>>, vector<1x4x128xbf16>
    %4 = vector.shape_cast %3 : vector<1x4x128xbf16> to vector<4x128xbf16>
    %cst = arith.constant dense<0.000000e+00> : vector<256x128xf32>
    %5 = tpu.matmul %2, %4, %cst {dimension_numbers = #tpu.dot_dimension_numbers<[1], [0], [0], [1], [0, 0, 1, 1], [], []>} : vector<256x4xbf16>, vector<4x128xbf16>, vector<256x128xf32> -> vector<256x128xf32>
    %c0_6 = arith.constant 0 : index
    %c0_7 = arith.constant 0 : index
    %6 = vector.load %arg3[%c0_6, %c0_7] : memref<256x128xf32, #tpu.memory_space<vmem>>, vector<256x128xf32>
    tpu.vector_store %arg3[%c0_6, %c0_7], %5 {strides = array<i32>} : memref<256x128xf32, #tpu.memory_space<vmem>>, vector<256x128xf32>,
    %c0_8 = arith.constant 0 : index
    %c0_9 = arith.constant 0 : index
    %c1 = arith.constant 1 : index
    %c0_10 = arith.constant 0 : index
    %7 = vector.load %arg1[%c0_8, %c0_9, %c1, %c0_10] : memref<1x18x18x4xbf16, #tpu.memory_space<vmem>>, vector<1x16x16x4xbf16>
    %8 = vector.shape_cast %7 : vector<1x16x16x4xbf16> to vector<16x16x4xbf16>
    %9 = vector.shape_cast %8 : vector<16x16x4xbf16> to vector<256x4xbf16>
    %c1_11 = arith.constant 1 : index
    %c0_12 = arith.constant 0 : index
    %c0_13 = arith.constant 0 : index
    %10 = vector.load %arg2[%c1_11, %c0_12, %c0_13] : memref<9x4x128xbf16, #tpu.memory_space<vmem>>, vector<1x4x128xbf16>
    %11 = vector.shape_cast %10 : vector<1x4x128xbf16> to vector<4x128xbf16>
    %cst_14 = arith.constant dense<0.000000e+00> : vector<256x128xf32>
    %12 = tpu.matmul %9, %11, %cst_14 {dimension_numbers = #tpu.dot_dimension_numbers<[1], [0], [0], [1], [0, 0, 1, 1], [], []>} : vector<256x4xbf16>, vector<4x128xbf16>, vector<256x128xf32> -> vector<256x128xf32>
    %c0_15 = arith.constant 0 : index
    %c0_16 = arith.constant 0 : index
    %13 = vector.load %arg3[%c0_15, %c0_16] : memref<256x128xf32, #tpu.memory_space<vmem>>, vector<256x128xf32>
    %14 = arith.addf %13, %12 : vector<256x128xf32>
    %c0_17 = arith.constant 0 : index
    %c0_18 = arith.constant 0 : index
    %15 = vector.load %arg3[%c0_17, %c0_18] : memref<256x128xf32, #tpu.memory_space<vmem>>, vector<256x128xf32>
    tpu.vector_store %arg3[%c0_17, %c0_18], %14 {strides = array<i32>} : memref<256x128xf32, #tpu.memory_space<vmem>>, vector<256x128xf32>,
    %c0_19 = arith.constant 0 : index
    %c0_20 = arith.constant 0 : index
    %c2 = arith.constant 2 : index
    %c0_21 = arith.constant 0 : index
    %16 = vector.load %arg1[%c0_19, %c0_20, %c2, %c0_21] : memref<1x18x18x4xbf16, #tpu.memory_space<vmem>>, vector<1x16x16x4xbf16>
    %17 = vector.shape_cast %16 : vector<1x16x16x4xbf16> to vector<16x16x4xbf16>
    %18 = vector.shape_cast %17 : vector<16x16x4xbf16> to vector<256x4xbf16>
    %c2_22 = arith.constant 2 : index
    %c0_23 = arith.constant 0 : index
    %c0_24 = arith.constant 0 : index
    %19 = vector.load %arg2[%c2_22, %c0_23, %c0_24] : memref<9x4x128xbf16, #tpu.memory_space<vmem>>, vector<1x4x128xbf16>
    %20 = vector.shape_cast %19 : vector<1x4x128xbf16> to vector<4x128xbf16>
    %cst_25 = arith.constant dense<0.000000e+00> : vector<256x128xf32>
    %21 = tpu.matmul %18, %20, %cst_25 {dimension_numbers = #tpu.dot_dimension_numbers<[1], [0], [0], [1], [0, 0, 1, 1], [], []>} : vector<256x4xbf16>, vector<4x128xbf16>, vector<256x128xf32> -> vector<256x128xf32>
    %c0_26 = arith.constant 0 : index
    %c0_27 = arith.constant 0 : index
    %22 = vector.load %arg3[%c0_26, %c0_27] : memref<256x128xf32, #tpu.memory_space<vmem>>, vector<256x128xf32>
    %23 = arith.addf %22, %21 : vector<256x128xf32>
    %c0_28 = arith.constant 0 : index
    %c0_29 = arith.constant 0 : index
    %24 = vector.load %arg3[%c0_28, %c0_29] : memref<256x128xf32, #tpu.memory_space<vmem>>, vector<256x128xf32>
    tpu.vector_store %arg3[%c0_28, %c0_29], %23 {strides = array<i32>} : memref<256x128xf32, #tpu.memory_space<vmem>>, vector<256x128xf32>,
    %c0_30 = arith.constant 0 : index
    %c1_31 = arith.constant 1 : index
    %c0_32 = arith.constant 0 : index
    %c0_33 = arith.constant 0 : index
    %25 = vector.load %arg1[%c0_30, %c1_31, %c0_32, %c0_33] : memref<1x18x18x4xbf16, #tpu.memory_space<vmem>>, vector<1x16x16x4xbf16>
    %26 = vector.shape_cast %25 : vector<1x16x16x4xbf16> to vector<16x16x4xbf16>
    %27 = vector.shape_cast %26 : vector<16x16x4xbf16> to vector<256x4xbf16>
    %c3 = arith.constant 3 : index
    %c0_34 = arith.constant 0 : index
    %c0_35 = arith.constant 0 : index
    %28 = vector.load %arg2[%c3, %c0_34, %c0_35] : memref<9x4x128xbf16, #tpu.memory_space<vmem>>, vector<1x4x128xbf16>
    %29 = vector.shape_cast %28 : vector<1x4x128xbf16> to vector<4x128xbf16>
    %cst_36 = arith.constant dense<0.000000e+00> : vector<256x128xf32>
    %30 = tpu.matmul %27, %29, %cst_36 {dimension_numbers = #tpu.dot_dimension_numbers<[1], [0], [0], [1], [0, 0, 1, 1], [], []>} : vector<256x4xbf16>, vector<4x128xbf16>, vector<256x128xf32> -> vector<256x128xf32>
    %c0_37 = arith.constant 0 : index
    %c0_38 = arith.constant 0 : index
    %31 = vector.load %arg3[%c0_37, %c0_38] : memref<256x128xf32, #tpu.memory_space<vmem>>, vector<256x128xf32>
    %32 = arith.addf %31, %30 : vector<256x128xf32>
    %c0_39 = arith.constant 0 : index
    %c0_40 = arith.constant 0 : index
    %33 = vector.load %arg3[%c0_39, %c0_40] : memref<256x128xf32, #tpu.memory_space<vmem>>, vector<256x128xf32>
    tpu.vector_store %arg3[%c0_39, %c0_40], %32 {strides = array<i32>} : memref<256x128xf32, #tpu.memory_space<vmem>>, vector<256x128xf32>,
    %c0_41 = arith.constant 0 : index
    %c1_42 = arith.constant 1 : index
    %c1_43 = arith.constant 1 : index
    %c0_44 = arith.constant 0 : index
    %34 = vector.load %arg1[%c0_41, %c1_42, %c1_43, %c0_44] : memref<1x18x18x4xbf16, #tpu.memory_space<vmem>>, vector<1x16x16x4xbf16>
    %35 = vector.shape_cast %34 : vector<1x16x16x4xbf16> to vector<16x16x4xbf16>
    %36 = vector.shape_cast %35 : vector<16x16x4xbf16> to vector<256x4xbf16>
    %c4 = arith.constant 4 : index
    %c0_45 = arith.constant 0 : index
    %c0_46 = arith.constant 0 : index
    %37 = vector.load %arg2[%c4, %c0_45, %c0_46] : memref<9x4x128xbf16, #tpu.memory_space<vmem>>, vector<1x4x128xbf16>
    %38 = vector.shape_cast %37 : vector<1x4x128xbf16> to vector<4x128xbf16>
    %cst_47 = arith.constant dense<0.000000e+00> : vector<256x128xf32>
    %39 = tpu.matmul %36, %38, %cst_47 {dimension_numbers = #tpu.dot_dimension_numbers<[1], [0], [0], [1], [0, 0, 1, 1], [], []>} : vector<256x4xbf16>, vector<4x128xbf16>, vector<256x128xf32> -> vector<256x128xf32>
    %c0_48 = arith.constant 0 : index
    %c0_49 = arith.constant 0 : index
    %40 = vector.load %arg3[%c0_48, %c0_49] : memref<256x128xf32, #tpu.memory_space<vmem>>, vector<256x128xf32>
    %41 = arith.addf %40, %39 : vector<256x128xf32>
    %c0_50 = arith.constant 0 : index
    %c0_51 = arith.constant 0 : index
    %42 = vector.load %arg3[%c0_50, %c0_51] : memref<256x128xf32, #tpu.memory_space<vmem>>, vector<256x128xf32>
    tpu.vector_store %arg3[%c0_50, %c0_51], %41 {strides = array<i32>} : memref<256x128xf32, #tpu.memory_space<vmem>>, vector<256x128xf32>,
    %c0_52 = arith.constant 0 : index
    %c1_53 = arith.constant 1 : index
    %c2_54 = arith.constant 2 : index
    %c0_55 = arith.constant 0 : index
    %43 = vector.load %arg1[%c0_52, %c1_53, %c2_54, %c0_55] : memref<1x18x18x4xbf16, #tpu.memory_space<vmem>>, vector<1x16x16x4xbf16>
    %44 = vector.shape_cast %43 : vector<1x16x16x4xbf16> to vector<16x16x4xbf16>
    %45 = vector.shape_cast %44 : vector<16x16x4xbf16> to vector<256x4xbf16>
    %c5 = arith.constant 5 : index
    %c0_56 = arith.constant 0 : index
    %c0_57 = arith.constant 0 : index
    %46 = vector.load %arg2[%c5, %c0_56, %c0_57] : memref<9x4x128xbf16, #tpu.memory_space<vmem>>, vector<1x4x128xbf16>
    %47 = vector.shape_cast %46 : vector<1x4x128xbf16> to vector<4x128xbf16>
    %cst_58 = arith.constant dense<0.000000e+00> : vector<256x128xf32>
    %48 = tpu.matmul %45, %47, %cst_58 {dimension_numbers = #tpu.dot_dimension_numbers<[1], [0], [0], [1], [0, 0, 1, 1], [], []>} : vector<256x4xbf16>, vector<4x128xbf16>, vector<256x128xf32> -> vector<256x128xf32>
    %c0_59 = arith.constant 0 : index
    %c0_60 = arith.constant 0 : index
    %49 = vector.load %arg3[%c0_59, %c0_60] : memref<256x128xf32, #tpu.memory_space<vmem>>, vector<256x128xf32>
    %50 = arith.addf %49, %48 : vector<256x128xf32>
    %c0_61 = arith.constant 0 : index
    %c0_62 = arith.constant 0 : index
    %51 = vector.load %arg3[%c0_61, %c0_62] : memref<256x128xf32, #tpu.memory_space<vmem>>, vector<256x128xf32>
    tpu.vector_store %arg3[%c0_61, %c0_62], %50 {strides = array<i32>} : memref<256x128xf32, #tpu.memory_space<vmem>>, vector<256x128xf32>,
    %c0_63 = arith.constant 0 : index
    %c2_64 = arith.constant 2 : index
    %c0_65 = arith.constant 0 : index
    %c0_66 = arith.constant 0 : index
    %52 = vector.load %arg1[%c0_63, %c2_64, %c0_65, %c0_66] : memref<1x18x18x4xbf16, #tpu.memory_space<vmem>>, vector<1x16x16x4xbf16>
    %53 = vector.shape_cast %52 : vector<1x16x16x4xbf16> to vector<16x16x4xbf16>
    %54 = vector.shape_cast %53 : vector<16x16x4xbf16> to vector<256x4xbf16>
    %c6 = arith.constant 6 : index
    %c0_67 = arith.constant 0 : index
    %c0_68 = arith.constant 0 : index
    %55 = vector.load %arg2[%c6, %c0_67, %c0_68] : memref<9x4x128xbf16, #tpu.memory_space<vmem>>, vector<1x4x128xbf16>
    %56 = vector.shape_cast %55 : vector<1x4x128xbf16> to vector<4x128xbf16>
    %cst_69 = arith.constant dense<0.000000e+00> : vector<256x128xf32>
    %57 = tpu.matmul %54, %56, %cst_69 {dimension_numbers = #tpu.dot_dimension_numbers<[1], [0], [0], [1], [0, 0, 1, 1], [], []>} : vector<256x4xbf16>, vector<4x128xbf16>, vector<256x128xf32> -> vector<256x128xf32>
    %c0_70 = arith.constant 0 : index
    %c0_71 = arith.constant 0 : index
    %58 = vector.load %arg3[%c0_70, %c0_71] : memref<256x128xf32, #tpu.memory_space<vmem>>, vector<256x128xf32>
    %59 = arith.addf %58, %57 : vector<256x128xf32>
    %c0_72 = arith.constant 0 : index
    %c0_73 = arith.constant 0 : index
    %60 = vector.load %arg3[%c0_72, %c0_73] : memref<256x128xf32, #tpu.memory_space<vmem>>, vector<256x128xf32>
    tpu.vector_store %arg3[%c0_72, %c0_73], %59 {strides = array<i32>} : memref<256x128xf32, #tpu.memory_space<vmem>>, vector<256x128xf32>,
    %c0_74 = arith.constant 0 : index
    %c2_75 = arith.constant 2 : index
    %c1_76 = arith.constant 1 : index
    %c0_77 = arith.constant 0 : index
    %61 = vector.load %arg1[%c0_74, %c2_75, %c1_76, %c0_77] : memref<1x18x18x4xbf16, #tpu.memory_space<vmem>>, vector<1x16x16x4xbf16>
    %62 = vector.shape_cast %61 : vector<1x16x16x4xbf16> to vector<16x16x4xbf16>
    %63 = vector.shape_cast %62 : vector<16x16x4xbf16> to vector<256x4xbf16>
    %c7 = arith.constant 7 : index
    %c0_78 = arith.constant 0 : index
    %c0_79 = arith.constant 0 : index
    %64 = vector.load %arg2[%c7, %c0_78, %c0_79] : memref<9x4x128xbf16, #tpu.memory_space<vmem>>, vector<1x4x128xbf16>
    %65 = vector.shape_cast %64 : vector<1x4x128xbf16> to vector<4x128xbf16>
    %cst_80 = arith.constant dense<0.000000e+00> : vector<256x128xf32>
    %66 = tpu.matmul %63, %65, %cst_80 {dimension_numbers = #tpu.dot_dimension_numbers<[1], [0], [0], [1], [0, 0, 1, 1], [], []>} : vector<256x4xbf16>, vector<4x128xbf16>, vector<256x128xf32> -> vector<256x128xf32>
    %c0_81 = arith.constant 0 : index
    %c0_82 = arith.constant 0 : index
    %67 = vector.load %arg3[%c0_81, %c0_82] : memref<256x128xf32, #tpu.memory_space<vmem>>, vector<256x128xf32>
    %68 = arith.addf %67, %66 : vector<256x128xf32>
    %c0_83 = arith.constant 0 : index
    %c0_84 = arith.constant 0 : index
    %69 = vector.load %arg3[%c0_83, %c0_84] : memref<256x128xf32, #tpu.memory_space<vmem>>, vector<256x128xf32>
    tpu.vector_store %arg3[%c0_83, %c0_84], %68 {strides = array<i32>} : memref<256x128xf32, #tpu.memory_space<vmem>>, vector<256x128xf32>,
    %c0_85 = arith.constant 0 : index
    %c2_86 = arith.constant 2 : index
    %c2_87 = arith.constant 2 : index
    %c0_88 = arith.constant 0 : index
    %70 = vector.load %arg1[%c0_85, %c2_86, %c2_87, %c0_88] : memref<1x18x18x4xbf16, #tpu.memory_space<vmem>>, vector<1x16x16x4xbf16>
    %71 = vector.shape_cast %70 : vector<1x16x16x4xbf16> to vector<16x16x4xbf16>
    %72 = vector.shape_cast %71 : vector<16x16x4xbf16> to vector<256x4xbf16>
    %c8 = arith.constant 8 : index
    %c0_89 = arith.constant 0 : index
    %c0_90 = arith.constant 0 : index
    %73 = vector.load %arg2[%c8, %c0_89, %c0_90] : memref<9x4x128xbf16, #tpu.memory_space<vmem>>, vector<1x4x128xbf16>
    %74 = vector.shape_cast %73 : vector<1x4x128xbf16> to vector<4x128xbf16>
    %cst_91 = arith.constant dense<0.000000e+00> : vector<256x128xf32>
    %75 = tpu.matmul %72, %74, %cst_91 {dimension_numbers = #tpu.dot_dimension_numbers<[1], [0], [0], [1], [0, 0, 1, 1], [], []>} : vector<256x4xbf16>, vector<4x128xbf16>, vector<256x128xf32> -> vector<256x128xf32>
    %c0_92 = arith.constant 0 : index
    %c0_93 = arith.constant 0 : index
    %76 = vector.load %arg3[%c0_92, %c0_93] : memref<256x128xf32, #tpu.memory_space<vmem>>, vector<256x128xf32>
    %77 = arith.addf %76, %75 : vector<256x128xf32>
    %c0_94 = arith.constant 0 : index
    %c0_95 = arith.constant 0 : index
    %78 = vector.load %arg3[%c0_94, %c0_95] : memref<256x128xf32, #tpu.memory_space<vmem>>, vector<256x128xf32>
    tpu.vector_store %arg3[%c0_94, %c0_95], %77 {strides = array<i32>} : memref<256x128xf32, #tpu.memory_space<vmem>>, vector<256x128xf32>,
    return
  }
  func.func @transform_0(%arg0: i32) -> (i32, i32, i32, i32) {
    %c0_i32 = arith.constant 0 : i32
    %c0_i32_0 = arith.constant 0 : i32
    %c0_i32_1 = arith.constant 0 : i32
    %c0_i32_2 = arith.constant 0 : i32
    return %arg0, %c0_i32, %c0_i32_0, %c0_i32_1 : i32, i32, i32, i32
  }
  func.func @transform_1(%arg0: i32) -> (i32, i32, i32) {
    %c0_i32 = arith.constant 0 : i32
    %c0_i32_0 = arith.constant 0 : i32
    %c0_i32_1 = arith.constant 0 : i32
    %c0_i32_2 = arith.constant 0 : i32
    return %c0_i32, %c0_i32_0, %c0_i32_1 : i32, i32, i32
  }
  func.func @transform_2(%arg0: i32) -> (i32, i32) {
    %c0_i32 = arith.constant 0 : i32
    %c0_i32_0 = arith.constant 0 : i32
    return %arg0, %c0_i32 : i32, i32
  }
}

</mosaic_0001>

<bundles_post_ra>
// kernel: ffconv2d_forward.1
= control target key start
LH: loop header
LB: loop body
LE: loop exit
PB: predicated region body
PF: predicated region fallthrough
CT: control target
= control target key end

     0   :  { %s6963_s9 = smov 0   ;;  %s8270_s0 = inlined_call_operand.vmem [shape: bf16[2,18,18,4], index: 0, kind: input, shape index: {}]   ;;  %s8271_s1 = inlined_call_operand.vmem [shape: bf16[9,4,128], index: 1, kind: input, shape index: {}]   ;;  %s8272_s2 = inlined_call_operand.vmem [shape: f32[512,128], index: 2, kind: output, shape index: {}]  }
   0x1 LB: > { %s6969_s10 = sadd.s32 4294967295, %s6946_s9   ;;  %p5485_p0 = scmp.ge.s32.totalorder %s6946_s9, 1  ;;  %s6946_s9 = sphi %s6963_s9, %s12_s9  }
   0x2   : > { %p112_p1 = scmp.lt.s32.totalorder %s6946_s9, 3 }
   0x4   : > { %p113_p2 = pnand %p5485_p0, %p112_p1 }
   0x5   : > { %v178_v0 = vld [vmem:[%s8271_s1] sm:$0x3] (!%p113_p2)  ;;  %vm308_vm0 = vcmask (!%p113_p2), 1041408   ;;  %p134_p3 = scmp.lt.s32.totalorder (!%p113_p2), %s6969_s10, 1  ;;  %v5521_v2 = vld [vmem:[%s8271_s1 + $0x2] sm:$0x3] (!%p113_p2) }
   0x6   : > { %116 = sbr.rel (%p113_p2) target bundleno = 539 (0x21b), region = 28  ;;  %6872 = vmatprep.subr.msk.bf16.mxu1 (!%p113_p2), %vm308_vm0, %v178_v0  ;;  %v310_v1 = vsel (!%p113_p2), %vm308_vm0, %v178_v0, 0  ;;  %v5716_v3 = vld [vmem:[%s8271_s1 + $0x8] sm:$0x3] (!%p113_p2)  ;;  %v5813_v5 = vld [vmem:[%s8271_s1 + $0xa] sm:$0x3] (!%p113_p2) }
   0x7   : > { %6245 = vmatpush3.bf16.msra.mxu1 (!%p113_p2), %v310_v1  ;;  %6876 = vmatprep.subr.msk.bf16.mxu0 (!%p113_p2), %vm308_vm0, %v5716_v3  ;;  %v6988_v4 = vsel (!%p113_p2), %vm308_vm0, %v5716_v3, 0  ;;  %vm259_vm1 = vcmask (!%p113_p2), 31744   ;;  %vm553_vm2 = vsmask.f32 (!%p113_p2), 3328  ;;  %vm554_vm3 = vsmask.f32 (!%p113_p2), 7440 }
   0x8   : > { %6873 = vmatprep.subr.msk.bf16.mxu1 (!%p113_p2), %vm308_vm0, %v5521_v2  ;;  %6381 = vmatpush3.bf16.msra.mxu0 (!%p113_p2), %v6988_v4  ;;  %v7004_v6 = vld [vmem:[%s8271_s1 + $0xc] sm:$0x3] (!%p113_p2)  ;;  %v5570_v7 = vld [vmem:[%s8271_s1 + $0x4] sm:$0x3] (!%p113_p2)  ;;  %v7012_v8 = vld [vmem:[%s8271_s1 + $0xe] sm:$0x3] (!%p113_p2) }
   0x9   : > { %6878 = vmatprep.subr.msk.bf16.mxu0 (!%p113_p2), %vm308_vm0, %v5813_v5  ;;  %v1039_v10 = vsel (!%p113_p2), %vm308_vm0, %v5521_v2, 0  ;;  %v7018_v12 = vsel (!%p113_p2), %vm308_vm0, %v5813_v5, 0  ;;  %v7024_v14 = vsel (!%p113_p2), %vm308_vm0, %v7004_v6, 0  ;;  %v7028_v15 = vsel (!%p113_p2), %vm308_vm0, %v5570_v7, 0  ;;  %vm7046_vm4 = vmor (!%p113_p2), %vm553_vm2, %vm554_vm3  ;;  %s5487_s8 = sshll.u32 (!%p113_p2), %s6969_s10, 5 }
   0xa   : > { %v7032_v16 = vsel (!%p113_p2), %vm308_vm0, %v7012_v8, 0  ;;  %vm1394_vm5 = vcmask (!%p113_p2), 1042432   ;;  %vm1395_vm6 = vcmask (!%p113_p2), 1046532   ;;  %p140_p4 = scmp.lt.s32.totalorder (!%p113_p2), %s5487_s8, 63 }
   0xb   : > { %vm7121_vm7 = vmor (!%p113_p2), %vm1394_vm5, %vm1395_vm6 }
   0xd   : > { %s135_s17 = scalar_select %p134_p3, %s6969_s10, 1 }
   0xe   : > { %s8278_s8 = smov (!%p140_p4, %s5487_s8), 63 }
   0xf   : > { %s6882_s20 = smul.u32 216, %s135_s17  ;;  %s5488_s11 = sshll.u32 %s8278_s8, 3 }
  0x10   : > { %s8233_s14 = scalar_lea.vmem %s8272_s2, %s5488_s11 }
  0x11   : > { %s6999_s23 = scalar_lea.vmem %s8270_s0, %s6882_s20 }
  0x12   : > { %v6891_v9 = vld [vmem:[%s6999_s23] sm:$0xff]   ;;  %v6892_v11 = vld [vmem:[%s6999_s23 + $0xc] sm:$0xff]   ;;  %v6893_v13 = vld [vmem:[%s6999_s23 + $0x18] sm:$0xff]  }
  0x13   : > { %6246 = vmatprep.mubr.msk.bf16.mxu1 %vm259_vm1, %v6891_v9  ;;  %v5668_v17 = vld [vmem:[%s6999_s23 + $0xc] sm:$0xf]  ;;  %v5669_v18 = vld [vmem:[%s6999_s23 + $0x10] sm:$0xf]  ;;  %v5670_v19 = vld [vmem:[%s6999_s23 + $0x14] sm:$0x1] }
  0x14   : > { %6247 = vmatmul.mubr.msk.bf16.vlgmr.msra.gmra.mrb[0].mxu1 %vm259_vm1, %v6892_v11  ;;  %v6894_v20 = vld [vmem:[%s6999_s23 + $0x24] sm:$0xff]   ;;  %v2339_v21 = vshrl.u32 %v5668_v17, 16  ;;  %v2342_v22 = vshll.u32 %v5668_v17, 16  ;;  %v2348_v23 = vshll.u32 %v5669_v18, 16  ;;  %v2352_v24 = vshrl.u32 %v5669_v18, 16  ;;  %v6895_v42 = vld [vmem:[%s6999_s23 + $0x30] sm:$0xff]  }
  0x15   : > { %6279 = vmatpush3.bf16.msra.mxu1 %v1039_v10  ;;  %6250 = vmatprep.mubr.msk.bf16.mxu1 %vm259_vm1, %v6893_v13  ;;  %v5671_v25 = vld [vmem:[%s6999_s23 + $0x18] sm:$0xf]  ;;  %v2358_v26 = vshll.u32 %v5670_v19, 16  ;;  %v5672_v27 = vld [vmem:[%s6999_s23 + $0x1c] sm:$0xf] }
  0x16   : > { %6874 = vmatprep.subr.msk.bf16.mxu1 %vm308_vm0, %v5570_v7  ;;  %v5673_v28 = vld [vmem:[%s6999_s23 + $0x20] sm:$0x1]  ;;  %v2363_v29 = vshrl.u32 %v5671_v25, 16  ;;  %v2341_v30 = vrot.slane %v2339_v21, 4  ;;  %v2344_v31 = vrot.slane %v2342_v22, 5  ;;  %v2350_v32 = vrot.slane %v2348_v23, 5 }
  0x17   : > { %v2354_v33 = vrot.slane %v2352_v24, 4  ;;  %v2360_v34 = vrot.slane %v2358_v26, 5  ;;  %v2366_v36 = vshll.u32 %v5671_v25, 16  ;;  %v2372_v37 = vshll.u32 %v5672_v27, 16  ;;  %v5674_v46 = vld [vmem:[%s6999_s23 + $0x24] sm:$0xf] }
  0x18   : > { %v2365_v35 = vrot.slane %v2363_v29, 4  ;;  %v2345_v38 = vor.u32 %v2344_v31, %v2341_v30  ;;  %v2376_v40 = vshrl.u32 %v5672_v27, 16  ;;  %v2382_v41 = vshll.u32 %v5673_v28, 16  ;;  %v5675_v51 = vld [vmem:[%s6999_s23 + $0x28] sm:$0xf]  ;;  %v6896_v60 = vld [vmem:[%s6999_s23 + $0x3c] sm:$0xff]  }
  0x19   : > { %v2355_v39 = vor.u32 %v2354_v33, %v2350_v32  ;;  %v2368_v44 = vrot.slane %v2366_v36, 5  ;;  %v2374_v45 = vrot.slane %v2372_v37, 5  ;;  %v5676_v53 = vld [vmem:[%s6999_s23 + $0x2c] sm:$0x1]  ;;  %v2387_v54 = vshrl.u32 %v5674_v46, 16 }
  0x1a   : > { %v2346_v47 = vrot.slane %v2345_v38, 4  ;;  %v2378_v49 = vrot.slane %v2376_v40, 4  ;;  %v2384_v50 = vrot.slane %v2382_v41, 5  ;;  %v2390_v55 = vshll.u32 %v5674_v46, 16  ;;  %v5677_v62 = vld [vmem:[%s6999_s23 + $0x30] sm:$0xf] }
  0x1b   : > { %v2356_v48 = vrot.slane %v2355_v39, 4  ;;  %v2369_v52 = vor.u32 %v2368_v44, %v2365_v35  ;;  %v2396_v56 = vshll.u32 %v5675_v51, 16  ;;  %v2400_v61 = vshrl.u32 %v5675_v51, 16  ;;  %v5678_v63 = vld [vmem:[%s6999_s23 + $0x34] sm:$0xf]  ;;  %v6897_v7 = vld [vmem:[%s6999_s23 + $0x48] sm:$0xff]  }
  0x1c   : > { %6251 = vmatmul.mubr.msk.bf16.gmra.mrb[4].mxu1 %vm259_vm1, %v6894_v20  ;;  %v2351_v57 = vsel %vm7046_vm4, %v2346_v47, %v2350_v32  ;;  %v2379_v59 = vor.u32 %v2378_v49, %v2374_v45  ;;  %v2389_v2 = vrot.slane %v2387_v54, 4  ;;  %v2392_v3 = vrot.slane %v2390_v55, 5  ;;  %v5679_v5 = vld [vmem:[%s6999_s23 + $0x38] sm:$0x1]  ;;  %v5680_v25 = vld [vmem:[%s6999_s23 + $0x3c] sm:$0xf] }
  0x1d   : > { %6254 = vmatprep.mubr.msk.bf16.mxu1 %vm259_vm1, %v6895_v42  ;;  %v2361_v58 = vsel %vm7046_vm4, %v2356_v48, %v2360_v34  ;;  %v2370_v1 = vrot.slane %v2369_v52, 4  ;;  %v2398_v10 = vrot.slane %v2396_v56, 5  ;;  %v2402_v11 = vrot.slane %v2400_v61, 4  ;;  %v5681_v30 = vld [vmem:[%s6999_s23 + $0x40] sm:$0xf]  ;;  %v6898_v49 = vld [vmem:[%s6999_s23 + $0x54] sm:$0xff]  }
  0x1e   : > { %v5717_v0 = vcombine.low %v2351_v57, %v2361_v58  ;;  %v2380_v9 = vrot.slane %v2379_v59, 4  ;;  %v2406_v13 = vshll.u32 %v5676_v53, 16  ;;  %v2393_v18 = vor.u32 %v2392_v3, %v2389_v2  ;;  %v5682_v37 = vld [vmem:[%s6999_s23 + $0x44] sm:$0x1]  ;;  %v5683_v40 = vld [vmem:[%s6999_s23 + $0x48] sm:$0xf] }
  0x1f   : > { %v2375_v17 = vsel %vm7046_vm4, %v2370_v1, %v2374_v45  ;;  %v2411_v19 = vshrl.u32 %v5677_v62, 16  ;;  %v2414_v20 = vshll.u32 %v5677_v62, 16  ;;  %v2403_v22 = vor.u32 %v2402_v11, %v2398_v10  ;;  %v5684_v46 = vld [vmem:[%s6999_s23 + $0x4c] sm:$0xf]  ;;  %v5685_v52 = vld [vmem:[%s6999_s23 + $0x50] sm:$0x1] }
  0x20   : > { %6382 = vmatprep.mubr.msk.bf16.mxu0 %vm259_vm1, %v5717_v0  ;;  %v2385_v21 = vsel %vm7046_vm4, %v2380_v9, %v2384_v50  ;;  %v2408_v23 = vrot.slane %v2406_v13, 5  ;;  %v2420_v24 = vshll.u32 %v5678_v63, 16  ;;  %v2394_v27 = vrot.slane %v2393_v18, 4  ;;  %v6899_v56 = vld [vmem:[%s6999_s23 + $0x60] sm:$0xff]   ;;  %v5687_v13 = vld [vmem:[%s6999_s23 + $0x58] sm:$0xf] }
  0x21   : > { %v5718_v26 = vcombine.low %v2375_v17, %v2385_v21  ;;  %v2413_v28 = vrot.slane %v2411_v19, 4  ;;  %v2416_v29 = vrot.slane %v2414_v20, 5  ;;  %v2404_v31 = vrot.slane %v2403_v22, 4  ;;  %v5688_v21 = vld [vmem:[%s6999_s23 + $0x5c] sm:$0x1] }
  0x22   : > { %v2422_v32 = vrot.slane %v2420_v24, 5  ;;  %v2424_v33 = vshrl.u32 %v5678_v63, 16  ;;  %v2430_v34 = vshll.u32 %v5679_v5, 16  ;;  %v2399_v35 = vsel %vm7046_vm4, %v2394_v27, %v2398_v10  ;;  %v5686_v5 = vld [vmem:[%s6999_s23 + $0x54] sm:$0xf] }
  0x23   : > { %6383 = vmatmul.mubr.msk.bf16.vlgmr.msra.gmra.mrb[0].mxu0 %vm259_vm1, %v5718_v26  ;;  %v2417_v36 = vor.u32 %v2416_v29, %v2413_v28  ;;  %v2435_v38 = vshrl.u32 %v5680_v25, 16  ;;  %v2438_v39 = vshll.u32 %v5680_v25, 16  ;;  %v2409_v41 = vsel %vm7046_vm4, %v2404_v31, %v2408_v23  ;;  %v5689_v22 = vld [vmem:[%s6999_s23 + $0x60] sm:$0xf]  ;;  %v5690_v27 = vld [vmem:[%s6999_s23 + $0x64] sm:$0xf] }
  0x24   : > { %6255 = vmatmul.mubr.msk.bf16.gmra.mrb[8].mxu1 %vm259_vm1, %v6896_v60  ;;  %6415 = vmatpush3.bf16.msra.mxu0 %v7018_v12  ;;  %v2426_v42 = vrot.slane %v2424_v33, 4  ;;  %v2432_v44 = vrot.slane %v2430_v34, 5  ;;  %v2444_v45 = vshll.u32 %v5681_v30, 16  ;;  %v5719_v47 = vcombine.low %v2399_v35, %v2409_v41 }
  0x25   : > { %6258 = vmatprep.mubr.msk.bf16.mxu1 %vm259_vm1, %v6897_v7  ;;  %v2418_v48 = vrot.slane %v2417_v36, 4  ;;  %v2437_v50 = vrot.slane %v2435_v38, 4  ;;  %v2440_v51 = vrot.slane %v2438_v39, 5  ;;  %6879 = vmatprep.subr.msk.bf16.mxu0 %vm308_vm0, %v7004_v6  ;;  %v2448_v12 = vshrl.u32 %v5681_v30, 16  ;;  %v6900_v30 = vld [vmem:[%s6999_s23 + $0x6c] sm:$0xff]   ;;  %v6901_v38 = vld [vmem:[%s6999_s23 + $0x78] sm:$0xff]  }
  0x26   : > { %v2427_v53 = vor.u32 %v2426_v42, %v2422_v32  ;;  %v2446_v54 = vrot.slane %v2444_v45, 5  ;;  %v2454_v55 = vshll.u32 %v5682_v37, 16  ;;  %6386 = vmatprep.mubr.msk.bf16.mxu0 %vm259_vm1, %v5719_v47  ;;  %v2459_v59 = vshrl.u32 %v5683_v40, 16  ;;  %v5691_v37 = vld [vmem:[%s6999_s23 + $0x68] sm:$0x1] }
  0x27   : > { %v2423_v57 = vsel %vm7046_vm4, %v2418_v48, %v2422_v32  ;;  %v2441_v58 = vor.u32 %v2440_v51, %v2437_v50  ;;  %v2462_v60 = vshll.u32 %v5683_v40, 16  ;;  %v2450_v62 = vrot.slane %v2448_v12, 4 }
  0x28   : > { %v2428_v61 = vrot.slane %v2427_v53, 4  ;;  %v2456_v63 = vrot.slane %v2454_v55, 5  ;;  %v2468_v0 = vshll.u32 %v5684_v46, 16  ;;  %v2461_v1 = vrot.slane %v2459_v59, 4  ;;  %v5753_v59 = vld [vmem:[%s6999_s23 + $0x1c] sm:$0xf] }
  0x29   : > { %v2442_v6 = vrot.slane %v2441_v58, 4  ;;  %v2464_v2 = vrot.slane %v2462_v60, 5  ;;  %v2472_v3 = vshrl.u32 %v5684_v46, 16  ;;  %v2451_v9 = vor.u32 %v2450_v62, %v2446_v54  ;;  %v5752_v58 = vld [vmem:[%s6999_s23 + $0x18] sm:$0xe] }
  0x2a   : > { %v2433_v7 = vsel %vm7046_vm4, %v2428_v61, %v2432_v44  ;;  %v2470_v10 = vrot.slane %v2468_v0, 5  ;;  %v2478_v11 = vshll.u32 %v5685_v52, 16  ;;  %v2483_v25 = vshrl.u32 %v5686_v5, 16  ;;  %v5749_v44 = vld [vmem:[%s6999_s23 + $0xc] sm:$0xe] }
  0x2b   : > { %v5720_v17 = vcombine.low %v2423_v57, %v2433_v7  ;;  %v2447_v18 = vsel %vm7046_vm4, %v2442_v6, %v2446_v54  ;;  %v2465_v19 = vor.u32 %v2464_v2, %v2461_v1  ;;  %v2474_v20 = vrot.slane %v2472_v3, 4  ;;  %v5751_v54 = vld [vmem:[%s6999_s23 + $0x14] sm:$0x1]  ;;  %v5754_v6 = vld [vmem:[%s6999_s23 + $0x20] sm:$0x1]  ;;  %v6902_v3 = vld [vmem:[%s6999_s23 + $0x84] sm:$0xff]  }
  0x2c   : > { %6259 = vmatmul.mubr.msk.bf16.gmra.mrb[12].mxu1 %vm259_vm1, %v6898_v49  ;;  %v2452_v23 = vrot.slane %v2451_v9, 4  ;;  %v2480_v24 = vrot.slane %v2478_v11, 5  ;;  %v2486_v26 = vshll.u32 %v5686_v5, 16  ;;  %v2492_v31 = vshll.u32 %v5687_v13, 16  ;;  %v5750_v49 = vld [vmem:[%s6999_s23 + $0x10] sm:$0xf] }
  0x2d   : > { %6262 = vmatprep.mubr.msk.bf16.mxu1 %vm259_vm1, %v6899_v56  ;;  %6387 = vmatmul.mubr.msk.bf16.gmra.mrb[4].mxu0 %vm259_vm1, %v5720_v17  ;;  %v2466_v28 = vrot.slane %v2465_v19, 4  ;;  %v2475_v29 = vor.u32 %v2474_v20, %v2470_v10  ;;  %v2496_v32 = vshrl.u32 %v5687_v13, 16  ;;  %v2485_v34 = vrot.slane %v2483_v25, 4 }
  0x2e   : > { %v2457_v33 = vsel %vm7046_vm4, %v2452_v23, %v2456_v63  ;;  %v2488_v35 = vrot.slane %v2486_v26, 5  ;;  %v2502_v36 = vshll.u32 %v5688_v21, 16  ;;  %v2494_v42 = vrot.slane %v2492_v31, 5  ;;  %v5755_v21 = vld [vmem:[%s6999_s23 + $0x24] sm:$0xe]  ;;  %v6903_v26 = vld [vmem:[%s6999_s23 + $0x90] sm:$0xff]  }
  0x2f   : > { %v5721_v39 = vcombine.low %v2447_v18, %v2457_v33  ;;  %v2471_v40 = vsel %vm7046_vm4, %v2466_v28, %v2470_v10  ;;  %v2476_v41 = vrot.slane %v2475_v29, 4  ;;  %v2498_v46 = vrot.slane %v2496_v32, 4 }
  0x30   : > { %v2489_v45 = vor.u32 %v2488_v35, %v2485_v34  ;;  %v2504_v47 = vrot.slane %v2502_v36, 5  ;;  %v2507_v48 = vshrl.u32 %v5689_v22, 16  ;;  %v2510_v51 = vshll.u32 %v5689_v22, 16  ;;  %v5758_v36 = vld [vmem:[%s6999_s23 + $0x30] sm:$0xe] }
  0x31   : > { %6390 = vmatprep.mubr.msk.bf16.mxu0 %vm259_vm1, %v5721_v39  ;;  %v2481_v50 = vsel %vm7046_vm4, %v2476_v41, %v2480_v24  ;;  %v2516_v52 = vshll.u32 %v5690_v27, 16  ;;  %v2520_v53 = vshrl.u32 %v5690_v27, 16  ;;  %v2499_v56 = vor.u32 %v2498_v46, %v2494_v42  ;;  %v5756_v27 = vld [vmem:[%s6999_s23 + $0x28] sm:$0xf] }
  0x32   : > { %v5722_v12 = vcombine.low %v2471_v40, %v2481_v50  ;;  %v2490_v55 = vrot.slane %v2489_v45, 4  ;;  %v2509_v57 = vrot.slane %v2507_v48, 4  ;;  %v2512_v60 = vrot.slane %v2510_v51, 5  ;;  %v5761_v50 = vld [vmem:[%s6999_s23 + $0x3c] sm:$0xe] }
  0x33   : > { %v2518_v61 = vrot.slane %v2516_v52, 5  ;;  %v2522_v62 = vrot.slane %v2520_v53, 4  ;;  %v2526_v63 = vshll.u32 %v5691_v37, 16  ;;  %v2500_v2 = vrot.slane %v2499_v56, 4  ;;  %v5759_v37 = vld [vmem:[%s6999_s23 + $0x34] sm:$0xf] }
  0x34   : > { %6263 = vmatmul.mubr.msk.bf16.gmra.mrb[16].mxu1 %vm259_vm1, %v6900_v30  ;;  %v2495_v1 = vsel %vm7046_vm4, %v2490_v55, %v2494_v42  ;;  %v5797_v5 = vrot.slane %v5749_v44, 9  ;;  %v3178_v7 = vrot.slane %v5750_v49, 5  ;;  %v2513_v9 = vor.u32 %v2512_v60, %v2509_v57  ;;  %v5757_v30 = vld [vmem:[%s6999_s23 + $0x2c] sm:$0x1]  ;;  %v5762_v51 = vld [vmem:[%s6999_s23 + $0x40] sm:$0xf] }
  0x35   : > { %6266 = vmatprep.mubr.msk.bf16.mxu1 %vm259_vm1, %v6901_v38  ;;  %6391 = vmatmul.mubr.msk.bf16.gmra.mrb[8].mxu0 %vm259_vm1, %v5722_v12  ;;  %v2523_v10 = vor.u32 %v2522_v62, %v2518_v61  ;;  %v2528_v11 = vrot.slane %v2526_v63, 5  ;;  %v3181_v13 = vrot.slane %v5751_v54, 5  ;;  %v2505_v17 = vsel %vm7046_vm4, %v2500_v2, %v2504_v47  ;;  %v5760_v38 = vld [vmem:[%s6999_s23 + $0x38] sm:$0x1]  ;;  %v6904_v52 = vld [vmem:[%s6999_s23 + $0x9c] sm:$0xff]  }
  0x36   : > { %v3179_v18 = vsel %vm7121_vm7, %v5797_v5, %v3178_v7  ;;  %v3180_v19 = vrot.slane %v3178_v7, 4  ;;  %v5798_v20 = vrot.slane %v5752_v58, 9  ;;  %v5723_v22 = vcombine.low %v2495_v1, %v2505_v17  ;;  %v5763_v55 = vld [vmem:[%s6999_s23 + $0x44] sm:$0x1]  ;;  %v5764_v56 = vld [vmem:[%s6999_s23 + $0x48] sm:$0xe] }
  0x37   : > { %v2514_v23 = vrot.slane %v2513_v9, 4  ;;  %v2524_v24 = vrot.slane %v2523_v10, 4  ;;  %v3185_v25 = vrot.slane %v5753_v59, 5  ;;  %v3188_v29 = vrot.slane %v5754_v6, 5  ;;  %v6905_v58 = vld [vmem:[%s6999_s23 + $0xa8] sm:$0xff]  }
  0x38   : > { %v3182_v28 = vsel %vm7121_vm7, %v3180_v19, %v3181_v13  ;;  %v5799_v31 = vrot.slane %v5755_v21, 9  ;;  %v3192_v32 = vrot.slane %v5756_v27, 5  ;;  %6394 = vmatprep.mubr.msk.bf16.mxu0 %vm259_vm1, %v5723_v22  ;;  %v3195_v44 = vrot.slane %v5757_v30, 5  ;;  %v5765_v62 = vld [vmem:[%s6999_s23 + $0x4c] sm:$0xf] }
  0x39   : > { %v2519_v33 = vsel %vm7046_vm4, %v2514_v23, %v2518_v61  ;;  %v2529_v34 = vsel %vm7046_vm4, %v2524_v24, %v2528_v11  ;;  %v5814_v35 = vcombine.low %v3179_v18, %v3182_v28  ;;  %v3186_v40 = vsel %vm7121_vm7, %v5798_v20, %v3185_v25  ;;  %v5766_v1 = vld [vmem:[%s6999_s23 + $0x50] sm:$0x1]  ;;  %v505_v5 = vld [vmem:[%s6999_s23] sm:$0xf]  ;;  %v506_v13 = vld [vmem:[%s6999_s23 + $0x4] sm:$0xf] }
  0x3a   : > { %v5724_v39 = vcombine.low %v2519_v33, %v2529_v34  ;;  %v3187_v41 = vrot.slane %v3185_v25, 4  ;;  %v3194_v42 = vrot.slane %v3192_v32, 4  ;;  %v5800_v45 = vrot.slane %v5758_v36, 9  ;;  %v507_v17 = vld [vmem:[%s6999_s23 + $0x8] sm:$0x1] }
  0x3b   : > { %v3199_v46 = vrot.slane %v5759_v37, 5  ;;  %v3202_v47 = vrot.slane %v5760_v38, 5  ;;  %v3193_v49 = vsel %vm7121_vm7, %v5799_v31, %v3192_v32  ;;  %v5801_v59 = vrot.slane %v5761_v50, 9  ;;  %v508_v22 = vld [vmem:[%s6999_s23 + $0xc] sm:$0xf] }
  0x3c   : > { %6267 = vmatmul.mubr.msk.bf16.gmra.mrb[20].mxu1 %vm259_vm1, %v6902_v3  ;;  %v3189_v48 = vsel %vm7121_vm7, %v3187_v41, %v3188_v29  ;;  %v3196_v53 = vsel %vm7121_vm7, %v3194_v42, %v3195_v44  ;;  %v3206_v60 = vrot.slane %v5762_v51, 5  ;;  %v3209_v61 = vrot.slane %v5763_v55, 5  ;;  %v509_v27 = vld [vmem:[%s6999_s23 + $0x10] sm:$0xf]  ;;  %v510_v32 = vld [vmem:[%s6999_s23 + $0x14] sm:$0x1] }
  0x3d   : > { %6270 = vmatprep.mubr.msk.bf16.mxu1 %vm259_vm1, %v6903_v26  ;;  %6395 = vmatmul.mubr.msk.bf16.gmra.mrb[12].mxu0 %vm259_vm1, %v5724_v39  ;;  %v7164_v54 = vsel %vm7121_vm7, %v5800_v45, %v3199_v46  ;;  %v3201_v12 = vrot.slane %v3199_v46, 4  ;;  %v5815_v57 = vcombine.low %v3186_v40, %v3189_v48  ;;  %v5816_v63 = vcombine.low %v3193_v49, %v3196_v53  ;;  %v5767_v33 = vld [vmem:[%s6999_s23 + $0x54] sm:$0xe]  ;;  %v5768_v38 = vld [vmem:[%s6999_s23 + $0x58] sm:$0xf] }
  0x3e   : > { %6416 = vmatprep.mubr.msk.bf16.mxu0 %vm259_vm1, %v5814_v35  ;;  %v5802_v2 = vrot.slane %v5764_v56, 9  ;;  %v3213_v3 = vrot.slane %v5765_v62, 5  ;;  %v7181_v9 = vsel %vm7121_vm7, %v5801_v59, %v3206_v60  ;;  %v3208_v10 = vrot.slane %v3206_v60, 4  ;;  %v5769_v44 = vld [vmem:[%s6999_s23 + $0x5c] sm:$0x1]  ;;  %v6906_v45 = vld [vmem:[%s6999_s23 + $0xb4] sm:$0xff]  }
  0x3f   : > { %v7173_v6 = vsel %vm7121_vm7, %v3201_v12, %v3202_v47  ;;  %v3216_v11 = vrot.slane %v5766_v1, 5  ;;  %v557_v20 = vshrl.u32 %v505_v5, 16  ;;  %v560_v21 = vshll.u32 %v505_v5, 16  ;;  %v5770_v50 = vld [vmem:[%s6999_s23 + $0x60] sm:$0xe] }
  0x40   : > { %v5817_v7 = vcombine.low %v7164_v54, %v7173_v6  ;;  %v7187_v18 = vsel %vm7121_vm7, %v5802_v2, %v3213_v3  ;;  %v3215_v19 = vrot.slane %v3213_v3, 4  ;;  %v7193_v23 = vsel %vm7121_vm7, %v3208_v10, %v3209_v61  ;;  %v5771_v55 = vld [vmem:[%s6999_s23 + $0x64] sm:$0xf]  ;;  %v5772_v59 = vld [vmem:[%s6999_s23 + $0x68] sm:$0x1] }
  0x41   : > { %v566_v24 = vshll.u32 %v506_v13, 16  ;;  %v570_v25 = vshrl.u32 %v506_v13, 16  ;;  %v576_v26 = vshll.u32 %v507_v17, 16  ;;  %v5818_v28 = vcombine.low %v7181_v9, %v7193_v23  ;;  %v511_v1 = vld [vmem:[%s6999_s23 + $0x18] sm:$0xf] }
  0x42   : > { %v7201_v29 = vsel %vm7121_vm7, %v3215_v19, %v3216_v11  ;;  %v559_v30 = vrot.slane %v557_v20, 4  ;;  %v562_v31 = vrot.slane %v560_v21, 5  ;;  %v581_v40 = vshrl.u32 %v508_v22, 16  ;;  %v512_v19 = vld [vmem:[%s6999_s23 + $0x1c] sm:$0xf] }
  0x43   : > { %v5819_v34 = vcombine.low %v7187_v18, %v7201_v29  ;;  %v568_v35 = vrot.slane %v566_v24, 5  ;;  %v572_v36 = vrot.slane %v570_v25, 4  ;;  %v578_v37 = vrot.slane %v576_v26, 5  ;;  %v516_v9 = vld [vmem:[%s6999_s23 + $0x2c] sm:$0x1] }
  0x44   : > { %6271 = vmatmul.mubr.msk.bf16.gmra.mrb[24].mxu1 %vm259_vm1, %v6904_v52  ;;  %v563_v39 = vor.u32 %v562_v31, %v559_v30  ;;  %v584_v41 = vshll.u32 %v508_v22, 16  ;;  %v590_v42 = vshll.u32 %v509_v27, 16  ;;  %v594_v47 = vshrl.u32 %v509_v27, 16  ;;  %v513_v22 = vld [vmem:[%s6999_s23 + $0x20] sm:$0x1] }
  0x45   : > { %6274 = vmatprep.mubr.msk.bf16.mxu1 %vm259_vm1, %v6905_v58  ;;  %6417 = vmatmul.mubr.msk.bf16.vlgmr.msra.gmra.mrb[0].mxu0 %vm259_vm1, %v5815_v57  ;;  %v573_v46 = vor.u32 %v572_v36, %v568_v35  ;;  %v600_v48 = vshll.u32 %v510_v32, 16  ;;  %v5803_v49 = vrot.slane %v5767_v33, 9  ;;  %v583_v52 = vrot.slane %v581_v40, 4  ;;  %v514_v32 = vld [vmem:[%s6999_s23 + $0x24] sm:$0xf] }
  0x46   : > { %6449 = vmatpush3.bf16.msra.mxu0 %v7024_v14  ;;  %6420 = vmatprep.mubr.msk.bf16.mxu0 %vm259_vm1, %v5816_v63  ;;  %v564_v51 = vrot.slane %v563_v39, 4  ;;  %v586_v53 = vrot.slane %v584_v41, 5  ;;  %v592_v12 = vrot.slane %v590_v42, 5  ;;  %v596_v14 = vrot.slane %v594_v47, 4  ;;  %v5773_v23 = vld [vmem:[%s6999_s23 + $0x6c] sm:$0xe] }
  0x47   : > { %6880 = vmatprep.subr.msk.bf16.mxu0 %vm308_vm0, %v7012_v8  ;;  %v574_v56 = vrot.slane %v573_v46, 4  ;;  %v602_v57 = vrot.slane %v600_v48, 5  ;;  %v3220_v58 = vrot.slane %v5768_v38, 5  ;;  %v3223_v62 = vrot.slane %v5769_v44, 5  ;;  %v5774_v44 = vld [vmem:[%s6999_s23 + $0x70] sm:$0xf] }
  0x48   : > { %v569_v60 = vsel %vm7046_vm4, %v564_v51, %v568_v35  ;;  %v587_v61 = vor.u32 %v586_v53, %v583_v52  ;;  %v5804_v63 = vrot.slane %v5770_v50, 9  ;;  %v597_v8 = vor.u32 %v596_v14, %v592_v12  ;;  %v515_v35 = vld [vmem:[%s6999_s23 + $0x28] sm:$0xf]  ;;  %v5776_v50 = vld [vmem:[%s6999_s23 + $0x78] sm:$0xe] }
  0x49   : > { %v579_v2 = vsel %vm7046_vm4, %v574_v56, %v578_v37  ;;  %v7226_v3 = vsel %vm7121_vm7, %v5803_v49, %v3220_v58  ;;  %v3222_v5 = vrot.slane %v3220_v58, 4  ;;  %v3227_v13 = vrot.slane %v5771_v55, 5  ;;  %v5777_v55 = vld [vmem:[%s6999_s23 + $0x7c] sm:$0xf] }
  0x4a   : > { %v5522_v10 = vcombine.low %v569_v60, %v579_v2  ;;  %v588_v11 = vrot.slane %v587_v61, 4  ;;  %v3230_v17 = vrot.slane %v5772_v59, 5  ;;  %v598_v20 = vrot.slane %v597_v8, 4  ;;  %v5778_v59 = vld [vmem:[%s6999_s23 + $0x80] sm:$0x1] }
  0x4b   : > { %v3224_v21 = vsel %vm7121_vm7, %v3222_v5, %v3223_v62  ;;  %v605_v24 = vshrl.u32 %v511_v1, 16  ;;  %v608_v25 = vshll.u32 %v511_v1, 16  ;;  %v7242_v30 = vsel %vm7121_vm7, %v5804_v63, %v3227_v13  ;;  %v517_v1 = vld [vmem:[%s6999_s23 + $0x30] sm:$0xf] }
  0x4c   : > { %6275 = vmatmul.mubr.msk.bf16.gmra.mrb[28].mxu1 %vm259_vm1, %v6906_v45  ;;  %v593_v26 = vsel %vm7046_vm4, %v588_v11, %v592_v12  ;;  %v5820_v27 = vcombine.low %v7226_v3, %v3224_v21  ;;  %v3229_v31 = vrot.slane %v3227_v13, 4  ;;  %v603_v54 = vsel %vm7046_vm4, %v598_v20, %v602_v57  ;;  %v5775_v45 = vld [vmem:[%s6999_s23 + $0x74] sm:$0x1] }
  0x4d   : > { %6421 = vmatmul.mubr.msk.bf16.gmra.mrb[4].mxu0 %vm259_vm1, %v5817_v7  ;;  %6280 = vmatprep.mubr.msk.bf16.mxu1 %vm259_vm1, %v5522_v10  ;;  %v607_v6 = vrot.slane %v605_v24, 4  ;;  %v610_v7 = vrot.slane %v608_v25, 5  ;;  %v614_v33 = vshll.u32 %v512_v19, 16  ;;  %v5523_v36 = vcombine.low %v593_v26, %v603_v54  ;;  %v519_v25 = vld [vmem:[%s6999_s23 + $0x38] sm:$0x1] }
  0x4e   : > { %6424 = vmatprep.mubr.msk.bf16.mxu0 %vm259_vm1, %v5818_v28  ;;  %v7254_v37 = vsel %vm7121_vm7, %v3229_v31, %v3230_v17  ;;  %v618_v38 = vshrl.u32 %v512_v19, 16  ;;  %v624_v39 = vshll.u32 %v513_v22, 16  ;;  %v629_v42 = vshrl.u32 %v514_v32, 16  ;;  %v520_v26 = vld [vmem:[%s6999_s23 + $0x3c] sm:$0xf] }
  0x4f   : > { %v5821_v28 = vcombine.low %v7242_v30, %v7254_v37  ;;  %v611_v40 = vor.u32 %v610_v7, %v607_v6  ;;  %v616_v41 = vrot.slane %v614_v33, 5  ;;  %v632_v48 = vshll.u32 %v514_v32, 16 }
  0x50   : > { %v620_v46 = vrot.slane %v618_v38, 4  ;;  %v626_v47 = vrot.slane %v624_v39, 5  ;;  %v638_v49 = vshll.u32 %v515_v35, 16  ;;  %v631_v52 = vrot.slane %v629_v42, 4 }
  0x51   : > { %v612_v51 = vrot.slane %v611_v40, 4  ;;  %v642_v53 = vshrl.u32 %v515_v35, 16  ;;  %v648_v12 = vshll.u32 %v516_v9, 16  ;;  %v634_v14 = vrot.slane %v632_v48, 5 }
  0x52   : > { %v621_v56 = vor.u32 %v620_v46, %v616_v41  ;;  %v640_v57 = vrot.slane %v638_v49, 5  ;;  %v5805_v58 = vrot.slane %v5773_v23, 9  ;;  %v3234_v63 = vrot.slane %v5774_v44, 5  ;;  %v522_v23 = vld [vmem:[%s6999_s23 + $0x44] sm:$0x1] }
  0x53   : > { %v617_v60 = vsel %vm7046_vm4, %v612_v51, %v616_v41  ;;  %v644_v61 = vrot.slane %v642_v53, 4  ;;  %v650_v62 = vrot.slane %v648_v12, 5  ;;  %v3237_v8 = vrot.slane %v5775_v45, 5  ;;  %v5779_v41 = vld [vmem:[%s6999_s23 + $0x84] sm:$0xe] }
  0x54   : > { %6281 = vmatmul.mubr.msk.bf16.vlgmr.msra.gmra.mrb[0].mxu1 %vm259_vm1, %v5523_v36  ;;  %v622_v2 = vrot.slane %v621_v56, 4  ;;  %v5806_v3 = vrot.slane %v5776_v50, 9  ;;  %v3235_v10 = vsel %vm7121_vm7, %v5805_v58, %v3234_v63  ;;  %v3236_v11 = vrot.slane %v3234_v63, 4  ;;  %v521_v36 = vld [vmem:[%s6999_s23 + $0x40] sm:$0xf] }
  0x55   : > { %6313 = vmatpush3.bf16.msra.mxu1 %v7028_v15  ;;  %6425 = vmatmul.mubr.msk.bf16.gmra.mrb[8].mxu0 %vm259_vm1, %v5819_v34  ;;  %v635_v15 = vor.u32 %v634_v14, %v631_v52  ;;  %v645_v5 = vor.u32 %v644_v61, %v640_v57  ;;  %v3241_v13 = vrot.slane %v5777_v55, 5  ;;  %v3244_v29 = vrot.slane %v5778_v59, 5  ;;  %v518_v34 = vld [vmem:[%s6999_s23 + $0x34] sm:$0xf]  ;;  %v5781_v56 = vld [vmem:[%s6999_s23 + $0x8c] sm:$0x1] }
  0x56   : > { %6428 = vmatprep.mubr.msk.bf16.mxu0 %vm259_vm1, %v5820_v27  ;;  %v627_v17 = vsel %vm7046_vm4, %v622_v2, %v626_v47  ;;  %v653_v19 = vshrl.u32 %v517_v1, 16  ;;  %v3238_v22 = vsel %vm7121_vm7, %v3236_v11, %v3237_v8  ;;  %v656_v7 = vshll.u32 %v517_v1, 16  ;;  %v5780_v47 = vld [vmem:[%s6999_s23 + $0x88] sm:$0xf]  ;;  %v5784_v8 = vld [vmem:[%s6999_s23 + $0x98] sm:$0x1] }
  0x57   : > { %v636_v18 = vrot.slane %v635_v15, 4  ;;  %v5524_v20 = vcombine.low %v617_v60, %v627_v17  ;;  %v646_v21 = vrot.slane %v645_v5, 4  ;;  %v7284_v24 = vsel %vm7121_vm7, %v5806_v3, %v3241_v13  ;;  %v523_v3 = vld [vmem:[%s6999_s23 + $0x48] sm:$0xf] }
  0x58   : > { %v5822_v31 = vcombine.low %v3235_v10, %v3238_v22  ;;  %v3243_v32 = vrot.slane %v3241_v13, 4  ;;  %v655_v54 = vrot.slane %v653_v19, 4  ;;  %v662_v33 = vshll.u32 %v518_v34, 16  ;;  %v524_v19 = vld [vmem:[%s6999_s23 + $0x4c] sm:$0xf] }
  0x59   : > { %v641_v27 = vsel %vm7046_vm4, %v636_v18, %v640_v57  ;;  %6284 = vmatprep.mubr.msk.bf16.mxu1 %vm259_vm1, %v5524_v20  ;;  %v651_v6 = vsel %vm7046_vm4, %v646_v21, %v650_v62  ;;  %v666_v35 = vshrl.u32 %v518_v34, 16  ;;  %v672_v9 = vshll.u32 %v519_v25, 16  ;;  %v5782_v57 = vld [vmem:[%s6999_s23 + $0x90] sm:$0xe]  ;;  %v5783_v62 = vld [vmem:[%s6999_s23 + $0x94] sm:$0xf] }
  0x5a   : > { %v5525_v38 = vcombine.low %v641_v27, %v651_v6  ;;  %v3245_v39 = vsel %vm7121_vm7, %v3243_v32, %v3244_v29  ;;  %v677_v40 = vshrl.u32 %v520_v26, 16  ;;  %v658_v44 = vrot.slane %v656_v7, 5 }
  0x5b   : > { %v5823_v42 = vcombine.low %v7284_v24, %v3245_v39  ;;  %v664_v45 = vrot.slane %v662_v33, 5  ;;  %v668_v46 = vrot.slane %v666_v35, 4  ;;  %v674_v48 = vrot.slane %v672_v9, 5  ;;  %v525_v24 = vld [vmem:[%s6999_s23 + $0x50] sm:$0x1] }
  0x5c   : > { %6285 = vmatmul.mubr.msk.bf16.gmra.mrb[4].mxu1 %vm259_vm1, %v5525_v38  ;;  %v679_v49 = vrot.slane %v677_v40, 4  ;;  %v680_v50 = vshll.u32 %v520_v26, 16  ;;  %v686_v51 = vshll.u32 %v521_v36, 16  ;;  %v659_v52 = vor.u32 %v658_v44, %v655_v54  ;;  %v526_v54 = vld [vmem:[%s6999_s23 + $0x54] sm:$0xf] }
  0x5d   : > { %6429 = vmatmul.mubr.msk.bf16.gmra.mrb[12].mxu0 %vm259_vm1, %v5821_v28  ;;  %v669_v53 = vor.u32 %v668_v46, %v664_v45  ;;  %v690_v12 = vshrl.u32 %v521_v36, 16  ;;  %v696_v55 = vshll.u32 %v522_v23, 16  ;;  %v5807_v28 = vrot.slane %v5779_v41, 9  ;;  %v527_v36 = vld [vmem:[%s6999_s23 + $0x58] sm:$0xf] }
  0x5e   : > { %6432 = vmatprep.mubr.msk.bf16.mxu0 %vm259_vm1, %v5822_v31  ;;  %v682_v30 = vrot.slane %v680_v50, 5  ;;  %v688_v37 = vrot.slane %v686_v51, 5  ;;  %v3248_v14 = vrot.slane %v5780_v47, 5  ;;  %v660_v58 = vrot.slane %v659_v52, 4  ;;  %v528_v40 = vld [vmem:[%s6999_s23 + $0x5c] sm:$0x1] }
  0x5f   : > { %v670_v59 = vrot.slane %v669_v53, 4  ;;  %v692_v60 = vrot.slane %v690_v12, 4  ;;  %v698_v61 = vrot.slane %v696_v55, 5  ;;  %v3251_v15 = vrot.slane %v5781_v56, 5  ;;  %v5785_v41 = vld [vmem:[%s6999_s23 + $0x9c] sm:$0xe] }
  0x60   : > { %v683_v63 = vor.u32 %v682_v30, %v679_v49  ;;  %v3249_v1 = vsel %vm7121_vm7, %v5807_v28, %v3248_v14  ;;  %v3250_v2 = vrot.slane %v3248_v14, 4  ;;  %v665_v5 = vsel %vm7046_vm4, %v660_v58, %v664_v45  ;;  %v5786_v47 = vld [vmem:[%s6999_s23 + $0xa0] sm:$0xf]  ;;  %v5787_v52 = vld [vmem:[%s6999_s23 + $0xa4] sm:$0x1] }
  0x61   : > { %v675_v10 = vsel %vm7046_vm4, %v670_v59, %v674_v48  ;;  %v693_v11 = vor.u32 %v692_v60, %v688_v37  ;;  %v5808_v13 = vrot.slane %v5782_v57, 9  ;;  %v3255_v34 = vrot.slane %v5783_v62, 5  ;;  %v5788_v30 = vld [vmem:[%s6999_s23 + $0xa8] sm:$0xe]  ;;  %v5789_v58 = vld [vmem:[%s6999_s23 + $0xac] sm:$0xf] }
  0x62   : > { %v5526_v17 = vcombine.low %v665_v5, %v675_v10  ;;  %v684_v18 = vrot.slane %v683_v63, 4  ;;  %v3252_v29 = vsel %vm7121_vm7, %v3250_v2, %v3251_v15  ;;  %v3258_v22 = vrot.slane %v5784_v8, 5  ;;  %v5790_v63 = vld [vmem:[%s6999_s23 + $0xb0] sm:$0x1]  ;;  %v530_v5 = vld [vmem:[%s6999_s23 + $0x64] sm:$0xf] }
  0x63   : > { %v694_v20 = vrot.slane %v693_v11, 4  ;;  %v5824_v21 = vcombine.low %v3249_v1, %v3252_v29  ;;  %v701_v25 = vshrl.u32 %v523_v3, 16  ;;  %v3256_v27 = vsel %vm7121_vm7, %v5808_v13, %v3255_v34 }
  0x64   : > { %6288 = vmatprep.mubr.msk.bf16.mxu1 %vm259_vm1, %v5526_v17  ;;  %v689_v26 = vsel %vm7046_vm4, %v684_v18, %v688_v37  ;;  %v3257_v31 = vrot.slane %v3255_v34, 4  ;;  %v704_v32 = vshll.u32 %v523_v3, 16  ;;  %v710_v33 = vshll.u32 %v524_v19, 16  ;;  %v529_v3 = vld [vmem:[%s6999_s23 + $0x60] sm:$0xf] }
  0x65   : > { %6433 = vmatmul.mubr.msk.bf16.gmra.mrb[16].mxu0 %vm259_vm1, %v5823_v42  ;;  %v699_v6 = vsel %vm7046_vm4, %v694_v20, %v698_v61  ;;  %v703_v7 = vrot.slane %v701_v25, 4  ;;  %v714_v35 = vshrl.u32 %v524_v19, 16  ;;  %v720_v23 = vshll.u32 %v525_v24, 16  ;;  %v531_v18 = vld [vmem:[%s6999_s23 + $0x68] sm:$0x1] }
  0x66   : > { %6436 = vmatprep.mubr.msk.bf16.mxu0 %vm259_vm1, %v5824_v21  ;;  %v5527_v38 = vcombine.low %v689_v26, %v699_v6  ;;  %v3259_v39 = vsel %vm7121_vm7, %v3257_v31, %v3258_v22  ;;  %v706_v9 = vrot.slane %v704_v32, 5  ;;  %v712_v44 = vrot.slane %v710_v33, 5  ;;  %v532_v21 = vld [vmem:[%s6999_s23 + $0x6c] sm:$0xf]  ;;  %v533_v6 = vld [vmem:[%s6999_s23 + $0x70] sm:$0xf] }
  0x67   : > { %v5825_v42 = vcombine.low %v3256_v27, %v3259_v39  ;;  %v716_v45 = vrot.slane %v714_v35, 4  ;;  %v725_v46 = vshrl.u32 %v526_v54, 16  ;;  %v722_v49 = vrot.slane %v720_v23, 5 }
  0x68   : > { %6289 = vmatmul.mubr.msk.bf16.gmra.mrb[8].mxu1 %vm259_vm1, %v5527_v38  ;;  %v707_v48 = vor.u32 %v706_v9, %v703_v7  ;;  %v728_v50 = vshll.u32 %v526_v54, 16  ;;  %v734_v51 = vshll.u32 %v527_v36, 16  ;;  %v738_v55 = vshrl.u32 %v527_v36, 16  ;;  %v534_v38 = vld [vmem:[%s6999_s23 + $0x74] sm:$0x1] }
  0x69   : > { %v717_v53 = vor.u32 %v716_v45, %v712_v44  ;;  %v727_v12 = vrot.slane %v725_v46, 4  ;;  %v744_v56 = vshll.u32 %v528_v40, 16  ;;  %v5809_v57 = vrot.slane %v5785_v41, 9  ;;  %v5791_v41 = vld [vmem:[%s6999_s23 + $0xb4] sm:$0xe] }
  0x6a   : > { %v708_v37 = vrot.slane %v707_v48, 4  ;;  %v730_v28 = vrot.slane %v728_v50, 5  ;;  %v736_v14 = vrot.slane %v734_v51, 5  ;;  %v740_v60 = vrot.slane %v738_v55, 4  ;;  %v5793_v48 = vld [vmem:[%s6999_s23 + $0xbc] sm:$0x1] }
  0x6b   : > { %v718_v59 = vrot.slane %v717_v53, 4  ;;  %v746_v61 = vrot.slane %v744_v56, 5  ;;  %v3262_v62 = vrot.slane %v5786_v47, 5  ;;  %v3265_v15 = vrot.slane %v5787_v52, 5 }
  0x6c   : > { %v713_v1 = vsel %vm7046_vm4, %v708_v37, %v712_v44  ;;  %v731_v2 = vor.u32 %v730_v28, %v727_v12  ;;  %v5810_v8 = vrot.slane %v5788_v30, 9  ;;  %v741_v11 = vor.u32 %v740_v60, %v736_v14  ;;  %v5795_v12 = vld [vmem:[%s6999_s23 + $0xc4] sm:$0xf]  ;;  %v5796_v28 = vld [vmem:[%s6999_s23 + $0xc8] sm:$0x1] }
  0x6d   : > { %6437 = vmatmul.mubr.msk.bf16.gmra.mrb[20].mxu0 %vm259_vm1, %v5825_v42  ;;  %v723_v10 = vsel %vm7046_vm4, %v718_v59, %v722_v49  ;;  %v3263_v13 = vsel %vm7121_vm7, %v5809_v57, %v3262_v62  ;;  %v3264_v17 = vrot.slane %v3262_v62, 4  ;;  %v3269_v19 = vrot.slane %v5789_v58, 5  ;;  %v5792_v42 = vld [vmem:[%s6999_s23 + $0xb8] sm:$0xf]  ;;  %v5794_v49 = vld [vmem:[%s6999_s23 + $0xc0] sm:$0xe] }
  0x6e   : > { %v5528_v29 = vcombine.low %v713_v1, %v723_v10  ;;  %v732_v34 = vrot.slane %v731_v2, 4  ;;  %v3272_v20 = vrot.slane %v5790_v63, 5  ;;  %v742_v22 = vrot.slane %v741_v11, 4 }
  0x6f   : > { %v3266_v24 = vsel %vm7121_vm7, %v3264_v17, %v3265_v15  ;;  %v749_v25 = vshrl.u32 %v529_v3, 16  ;;  %v752_v26 = vshll.u32 %v529_v3, 16  ;;  %v3270_v32 = vsel %vm7121_vm7, %v5810_v8, %v3269_v19  ;;  %v536_v17 = vld [vmem:[%s6999_s23 + $0x7c] sm:$0xf] }
  0x70   : > { %6292 = vmatprep.mubr.msk.bf16.mxu1 %vm259_vm1, %v5528_v29  ;;  %v737_v27 = vsel %vm7046_vm4, %v732_v34, %v736_v14  ;;  %v5826_v31 = vcombine.low %v3263_v13, %v3266_v24  ;;  %v3271_v54 = vrot.slane %v3269_v19, 4  ;;  %v747_v7 = vsel %vm7046_vm4, %v742_v22, %v746_v61  ;;  %v535_v14 = vld [vmem:[%s6999_s23 + $0x78] sm:$0xf]  ;;  %v537_v19 = vld [vmem:[%s6999_s23 + $0x80] sm:$0x1] }
  0x71   : > { %v751_v33 = vrot.slane %v749_v25, 4  ;;  %v754_v35 = vrot.slane %v752_v26, 5  ;;  %v758_v36 = vshll.u32 %v530_v5, 16  ;;  %v5529_v39 = vcombine.low %v737_v27, %v747_v7  ;;  %v538_v26 = vld [vmem:[%s6999_s23 + $0x84] sm:$0xf] }
  0x72   : > { %6440 = vmatprep.mubr.msk.bf16.mxu0 %vm259_vm1, %v5826_v31  ;;  %v3273_v9 = vsel %vm7121_vm7, %v3271_v54, %v3272_v20  ;;  %v762_v23 = vshrl.u32 %v530_v5, 16  ;;  %v768_v40 = vshll.u32 %v531_v18, 16  ;;  %v773_v47 = vshrl.u32 %v532_v21, 16  ;;  %v539_v27 = vld [vmem:[%s6999_s23 + $0x88] sm:$0xf] }
  0x73   : > { %v5827_v44 = vcombine.low %v3270_v32, %v3273_v9  ;;  %v755_v45 = vor.u32 %v754_v35, %v751_v33  ;;  %v760_v46 = vrot.slane %v758_v36, 5  ;;  %6293 = vmatmul.mubr.msk.bf16.gmra.mrb[12].mxu1 %vm259_vm1, %v5529_v39  ;;  %v776_v52 = vshll.u32 %v532_v21, 16 }
  0x74   : > { %v764_v50 = vrot.slane %v762_v23, 4  ;;  %v770_v51 = vrot.slane %v768_v40, 5  ;;  %v782_v53 = vshll.u32 %v533_v6, 16  ;;  %v775_v56 = vrot.slane %v773_v47, 4  ;;  %v540_v40 = vld [vmem:[%s6999_s23 + $0x8c] sm:$0x1] }
  0x75   : > { %6441 = vmatmul.mubr.msk.bf16.gmra.mrb[24].mxu0 %vm259_vm1, %v5827_v44  ;;  %v756_v55 = vrot.slane %v755_v45, 4  ;;  %v786_v30 = vshrl.u32 %v533_v6, 16  ;;  %v792_v37 = vshll.u32 %v534_v38, 16  ;;  %v778_v58 = vrot.slane %v776_v52, 5  ;;  %v6907_v38 = vld [vmem:[%s6999_s23 + $0x18] sm:$0xff]  }
  0x76   : > { %v765_v57 = vor.u32 %v764_v50, %v760_v46  ;;  %v784_v59 = vrot.slane %v782_v53, 5  ;;  %v5811_v60 = vrot.slane %v5791_v41, 9  ;;  %v3276_v1 = vrot.slane %v5792_v42, 5  ;;  %v541_v47 = vld [vmem:[%s6999_s23 + $0x90] sm:$0xf] }
  0x77   : > { %v761_v61 = vsel %vm7046_vm4, %v756_v55, %v760_v46  ;;  %v788_v62 = vrot.slane %v786_v30, 4  ;;  %v794_v63 = vrot.slane %v792_v37, 5  ;;  %v779_v15 = vor.u32 %v778_v58, %v775_v56  ;;  %v542_v56 = vld [vmem:[%s6999_s23 + $0x94] sm:$0xf]  ;;  %v544_v58 = vld [vmem:[%s6999_s23 + $0x9c] sm:$0xf] }
  0x78   : > { %v766_v2 = vrot.slane %v765_v57, 4  ;;  %v3279_v8 = vrot.slane %v5793_v48, 5  ;;  %v5812_v3 = vrot.slane %v5794_v49, 9  ;;  %v3277_v10 = vsel %vm7121_vm7, %v5811_v60, %v3276_v1 }
  0x79   : > { %v789_v5 = vor.u32 %v788_v62, %v784_v59  ;;  %v3278_v11 = vrot.slane %v3276_v1, 4  ;;  %v3283_v13 = vrot.slane %v5795_v12, 5  ;;  %v780_v29 = vrot.slane %v779_v15, 4  ;;  %v7411_v1 = vld [vmem:[%s8271_s1 + $0x6] sm:$0x3] }
  0x7a   : > { %v771_v18 = vsel %vm7046_vm4, %v766_v2, %v770_v51  ;;  %v3286_v34 = vrot.slane %v5796_v28, 5  ;;  %v797_v20 = vshrl.u32 %v535_v14, 16  ;;  %v800_v33 = vshll.u32 %v535_v14, 16  ;;  %v543_v28 = vld [vmem:[%s6999_s23 + $0x98] sm:$0x1]  ;;  %6875 = vmatprep.subr.msk.bf16.mxu1 %vm308_vm0, %v7411_v1 }
  0x7b   : > { %v5530_v21 = vcombine.low %v761_v61, %v771_v18  ;;  %v790_v22 = vrot.slane %v789_v5, 4  ;;  %v3280_v24 = vsel %vm7121_vm7, %v3278_v11, %v3279_v8  ;;  %v3284_v25 = vsel %vm7121_vm7, %v5812_v3, %v3283_v13 }
  0x7c   : > { %v785_v31 = vsel %vm7046_vm4, %v780_v29, %v784_v59  ;;  %v5828_v32 = vcombine.low %v3277_v10, %v3280_v24  ;;  %v3285_v54 = vrot.slane %v3283_v13, 4  ;;  %v799_v6 = vrot.slane %v797_v20, 4  ;;  %v6908_v13 = vld [vmem:[%s6999_s23 + $0x24] sm:$0xff]   ;;  %v6909_v20 = vld [vmem:[%s6999_s23 + $0x30] sm:$0xff]  }
  0x7d   : > { %6296 = vmatprep.mubr.msk.bf16.mxu1 %vm259_vm1, %v5530_v21  ;;  %v795_v7 = vsel %vm7046_vm4, %v790_v22, %v794_v63  ;;  %v806_v35 = vshll.u32 %v536_v17, 16  ;;  %v810_v36 = vshrl.u32 %v536_v17, 16  ;;  %v816_v23 = vshll.u32 %v537_v19, 16  ;;  %v545_v63 = vld [vmem:[%s6999_s23 + $0xa0] sm:$0xf] }
  0x7e   : > { %v5531_v39 = vcombine.low %v785_v31, %v795_v7  ;;  %6444 = vmatprep.mubr.msk.bf16.mxu0 %vm259_vm1, %v5828_v32  ;;  %v3287_v9 = vsel %vm7121_vm7, %v3285_v54, %v3286_v34  ;;  %v821_v41 = vshrl.u32 %v538_v26, 16  ;;  %v802_v44 = vrot.slane %v800_v33, 5 }
  0x7f   : > { %v5829_v42 = vcombine.low %v3284_v25, %v3287_v9  ;;  %v808_v45 = vrot.slane %v806_v35, 5  ;;  %v812_v46 = vrot.slane %v810_v36, 4  ;;  %v818_v48 = vrot.slane %v816_v23, 5  ;;  %v546_v25 = vld [vmem:[%s6999_s23 + $0xa4] sm:$0x1] }
  0x80   : > { %6297 = vmatmul.mubr.msk.bf16.gmra.mrb[16].mxu1 %vm259_vm1, %v5531_v39  ;;  %v823_v49 = vrot.slane %v821_v41, 4  ;;  %v824_v50 = vshll.u32 %v538_v26, 16  ;;  %v830_v51 = vshll.u32 %v539_v27, 16  ;;  %v803_v52 = vor.u32 %v802_v44, %v799_v6  ;;  %v547_v6 = vld [vmem:[%s6999_s23 + $0xa8] sm:$0xf] }
  0x81   : > { %6445 = vmatmul.mubr.msk.bf16.gmra.mrb[28].mxu0 %vm259_vm1, %v5829_v42  ;;  %v813_v53 = vor.u32 %v812_v46, %v808_v45  ;;  %v834_v12 = vshrl.u32 %v539_v27, 16  ;;  %v840_v55 = vshll.u32 %v540_v40, 16  ;;  %v845_v14 = vshrl.u32 %v541_v47, 16  ;;  %v549_v41 = vld [vmem:[%s6999_s23 + $0xb0] sm:$0x1] }
  0x82   : > { %v826_v30 = vrot.slane %v824_v50, 5  ;;  %v832_v37 = vrot.slane %v830_v51, 5  ;;  %6450 = vmatprep.mubr.msk.bf16.mxu0 %vm259_vm1, %v6907_v38  ;;  %v848_v57 = vshll.u32 %v541_v47, 16  ;;  %v804_v59 = vrot.slane %v803_v52, 4  ;;  %v548_v38 = vld [vmem:[%s6999_s23 + $0xac] sm:$0xf] }
  0x83   : > { %v814_v60 = vrot.slane %v813_v53, 4  ;;  %v836_v61 = vrot.slane %v834_v12, 4  ;;  %v842_v62 = vrot.slane %v840_v55, 5  ;;  %v847_v15 = vrot.slane %v845_v14, 4  ;;  %v550_v42 = vld [vmem:[%s6999_s23 + $0xb4] sm:$0xf] }
  0x84   : > { %v827_v2 = vor.u32 %v826_v30, %v823_v49  ;;  %v850_v8 = vrot.slane %v848_v57, 5  ;;  %v854_v3 = vshll.u32 %v542_v56, 16  ;;  %v809_v5 = vsel %vm7046_vm4, %v804_v59, %v808_v45  ;;  %v6910_v55 = vld [vmem:[%s6999_s23 + $0x3c] sm:$0xff]  }
  0x85   : > { %v819_v10 = vsel %vm7046_vm4, %v814_v60, %v818_v48  ;;  %v837_v11 = vor.u32 %v836_v61, %v832_v37  ;;  %v858_v17 = vshrl.u32 %v542_v56, 16  ;;  %v864_v24 = vshll.u32 %v543_v28, 16  ;;  %v551_v48 = vld [vmem:[%s6999_s23 + $0xb8] sm:$0xf]  ;;  %v552_v57 = vld [vmem:[%s6999_s23 + $0xbc] sm:$0x1] }
  0x86   : > { %v5532_v18 = vcombine.low %v809_v5, %v819_v10  ;;  %v828_v29 = vrot.slane %v827_v2, 4  ;;  %v851_v34 = vor.u32 %v850_v8, %v847_v15  ;;  %v856_v19 = vrot.slane %v854_v3, 5  ;;  %v1299_v5 = vld [vmem:[%s6999_s23 + $0x4] sm:$0xf]  ;;  %v1300_v10 = vld [vmem:[%s6999_s23 + $0x8] sm:$0x1] }
  0x87   : > { %v838_v21 = vrot.slane %v837_v11, 4  ;;  %v860_v22 = vrot.slane %v858_v17, 4  ;;  %v869_v26 = vshrl.u32 %v544_v58, 16  ;;  %v872_v32 = vshll.u32 %v544_v58, 16  ;;  %v6911_v58 = vld [vmem:[%s6999_s23 + $0x48] sm:$0xff]  }
  0x88   : > { %6300 = vmatprep.mubr.msk.bf16.mxu1 %vm259_vm1, %v5532_v18  ;;  %v833_v27 = vsel %vm7046_vm4, %v828_v29, %v832_v37  ;;  %v852_v31 = vrot.slane %v851_v34, 4  ;;  %v878_v54 = vshll.u32 %v545_v63, 16  ;;  %v866_v35 = vrot.slane %v864_v24, 5  ;;  %v1301_v29 = vld [vmem:[%s6999_s23 + $0xc] sm:$0xe] }
  0x89   : > { %v843_v7 = vsel %vm7046_vm4, %v838_v21, %v842_v62  ;;  %6451 = vmatmul.mubr.msk.bf16.vlgmr.msra.gmra.mrb[0].mxu0 %vm259_vm1, %v6908_v13  ;;  %v861_v33 = vor.u32 %v860_v22, %v856_v19  ;;  %v871_v36 = vrot.slane %v869_v26, 4  ;;  %v874_v23 = vrot.slane %v872_v32, 5  ;;  %v1302_v22 = vld [vmem:[%s6999_s23 + $0x10] sm:$0xf]  ;;  %v1303_v24 = vld [vmem:[%s6999_s23 + $0x14] sm:$0x1] }
  0x8a   : > { %v5533_v39 = vcombine.low %v833_v27, %v843_v7  ;;  %6483 = vmatpush3.bf16.msra.mxu0 %v7032_v16  ;;  %v857_v9 = vsel %vm7046_vm4, %v852_v31, %v856_v19  ;;  %v880_v40 = vrot.slane %v878_v54, 5  ;;  %6454 = vmatprep.mubr.msk.bf16.mxu0 %vm259_vm1, %v6909_v20  ;;  %v882_v45 = vshrl.u32 %v545_v63, 16  ;;  %v1298_v63 = vld [vmem:[%s6999_s23] sm:$0xe]  ;;  %v1304_v32 = vld [vmem:[%s6999_s23 + $0x18] sm:$0xe] }
  0x8b   : > { %v862_v44 = vrot.slane %v861_v33, 4  ;;  %v888_v46 = vshll.u32 %v546_v25, 16  ;;  %v893_v47 = vshrl.u32 %v547_v6, 16  ;;  %v875_v16 = vor.u32 %v874_v23, %v871_v36  ;;  %v1305_v36 = vld [vmem:[%s6999_s23 + $0x1c] sm:$0xf] }
  0x8c   : > { %6301 = vmatmul.mubr.msk.bf16.gmra.mrb[20].mxu1 %vm259_vm1, %v5533_v39  ;;  %v896_v49 = vshll.u32 %v547_v6, 16  ;;  %v902_v50 = vshll.u32 %v548_v38, 16  ;;  %v906_v51 = vshrl.u32 %v548_v38, 16  ;;  %v884_v53 = vrot.slane %v882_v45, 4 }
  0x8d   : > { %v867_v52 = vsel %vm7046_vm4, %v862_v44, %v866_v35  ;;  %v890_v12 = vrot.slane %v888_v46, 5  ;;  %v895_v56 = vrot.slane %v893_v47, 4  ;;  %v876_v37 = vrot.slane %v875_v16, 4  ;;  %v6912_v35 = vld [vmem:[%s6999_s23 + $0x54] sm:$0xff]   ;;  %v1306_v46 = vld [vmem:[%s6999_s23 + $0x20] sm:$0x1] }
  0x8e   : > { %v5534_v30 = vcombine.low %v857_v9, %v867_v52  ;;  %v898_v28 = vrot.slane %v896_v49, 5  ;;  %v904_v14 = vrot.slane %v902_v50, 5  ;;  %v885_v59 = vor.u32 %v884_v53, %v880_v40  ;;  %v1307_v47 = vld [vmem:[%s6999_s23 + $0x24] sm:$0xe]  ;;  %v1309_v52 = vld [vmem:[%s6999_s23 + $0x2c] sm:$0x1] }
  0x8f   : > { %v908_v60 = vrot.slane %v906_v51, 4  ;;  %v912_v61 = vshll.u32 %v549_v41, 16  ;;  %v917_v62 = vshrl.u32 %v550_v42, 16  ;;  %v881_v2 = vsel %vm7046_vm4, %v876_v37, %v880_v40  ;;  %v6913_v40 = vld [vmem:[%s6999_s23 + $0x60] sm:$0xff]   ;;  %v1308_v51 = vld [vmem:[%s6999_s23 + $0x28] sm:$0xf] }
  0x90   : > { %6304 = vmatprep.mubr.msk.bf16.mxu1 %vm259_vm1, %v5534_v30  ;;  %v899_v15 = vor.u32 %v898_v28, %v895_v56  ;;  %v920_v8 = vshll.u32 %v550_v42, 16  ;;  %v926_v3 = vshll.u32 %v551_v48, 16  ;;  %v886_v11 = vrot.slane %v885_v59, 4  ;;  %v1310_v53 = vld [vmem:[%s6999_s23 + $0x30] sm:$0xe] }
  0x91   : > { %6455 = vmatmul.mubr.msk.bf16.gmra.mrb[4].mxu0 %vm259_vm1, %v6910_v55  ;;  %v909_v13 = vor.u32 %v908_v60, %v904_v14  ;;  %v914_v17 = vrot.slane %v912_v61, 5  ;;  %v919_v18 = vrot.slane %v917_v62, 4  ;;  %v930_v21 = vshrl.u32 %v551_v48, 16  ;;  %v1311_v37 = vld [vmem:[%s6999_s23 + $0x34] sm:$0xf] }
  0x92   : > { %v900_v34 = vrot.slane %v899_v15, 4  ;;  %v922_v19 = vrot.slane %v920_v8, 5  ;;  %v928_v20 = vrot.slane %v926_v3, 5  ;;  %6458 = vmatprep.mubr.msk.bf16.mxu0 %vm259_vm1, %v6911_v58  ;;  %v891_v25 = vsel %vm7046_vm4, %v886_v11, %v890_v12  ;;  %v1312_v28 = vld [vmem:[%s6999_s23 + $0x38] sm:$0x1] }
  0x93   : > { %v910_v26 = vrot.slane %v909_v13, 4  ;;  %v936_v27 = vshll.u32 %v552_v57, 16  ;;  %v5554_v31 = vrot.slane %v1298_v63, 9  ;;  %v5535_v54 = vcombine.low %v881_v2, %v891_v25  ;;  %v1314_v60 = vld [vmem:[%s6999_s23 + $0x40] sm:$0xf] }
  0x94   : > { %v905_v6 = vsel %vm7046_vm4, %v900_v34, %v904_v14  ;;  %v923_v7 = vor.u32 %v922_v19, %v919_v18  ;;  %v932_v33 = vrot.slane %v930_v21, 4  ;;  %v1399_v9 = vrot.slane %v1299_v5, 5  ;;  %v1315_v15 = vld [vmem:[%s6999_s23 + $0x44] sm:$0x1]  ;;  %v1316_v8 = vld [vmem:[%s6999_s23 + $0x48] sm:$0xe] }
  0x95   : > { %v915_v38 = vsel %vm7046_vm4, %v910_v26, %v914_v17  ;;  %v938_v39 = vrot.slane %v936_v27, 5  ;;  %v1402_v23 = vrot.slane %v1300_v10, 5  ;;  %6305 = vmatmul.mubr.msk.bf16.gmra.mrb[24].mxu1 %vm259_vm1, %v5535_v54  ;;  %v5555_v45 = vrot.slane %v1301_v29, 9  ;;  %v1317_v13 = vld [vmem:[%s6999_s23 + $0x4c] sm:$0xf] }
  0x96   : > { %v5536_v41 = vcombine.low %v905_v6, %v915_v38  ;;  %v924_v42 = vrot.slane %v923_v7, 4  ;;  %v933_v44 = vor.u32 %v932_v33, %v928_v20  ;;  %v1400_v48 = vsel %vm7121_vm7, %v5554_v31, %v1399_v9  ;;  %v6914_v18 = vld [vmem:[%s6999_s23 + $0x6c] sm:$0xff]   ;;  %v1319_v27 = vld [vmem:[%s6999_s23 + $0x54] sm:$0xe]  ;;  %v1320_v7 = vld [vmem:[%s6999_s23 + $0x58] sm:$0xf] }
  0x97   : > { %v1401_v16 = vrot.slane %v1399_v9, 4  ;;  %v1406_v49 = vrot.slane %v1302_v22, 5  ;;  %v1409_v50 = vrot.slane %v1303_v24, 5  ;;  %v7477_v56 = vsel %vm308_vm0, %v7411_v1, 0  ;;  %v1313_v1 = vld [vmem:[%s6999_s23 + $0x3c] sm:$0xe] }
  0x98   : > { %6308 = vmatprep.mubr.msk.bf16.mxu1 %vm259_vm1, %v5536_v41  ;;  %v929_v12 = vsel %vm7046_vm4, %v924_v42, %v928_v20  ;;  %v934_v55 = vrot.slane %v933_v44, 4  ;;  %v5556_v30 = vrot.slane %v1304_v32, 9  ;;  %v1413_v59 = vrot.slane %v1305_v36, 5  ;;  %v1318_v20 = vld [vmem:[%s6999_s23 + $0x50] sm:$0x1]  ;;  %v6915_v22 = vld [vmem:[%s6999_s23 + $0x78] sm:$0xff]  }
  0x99   : > { %6459 = vmatmul.mubr.msk.bf16.gmra.mrb[8].mxu0 %vm259_vm1, %v6912_v35  ;;  %v1403_v14 = vsel %vm7121_vm7, %v1401_v16, %v1402_v23  ;;  %v7486_v57 = vsel %vm7121_vm7, %v5555_v45, %v1406_v49  ;;  %v1408_v58 = vrot.slane %v1406_v49, 4  ;;  %v1416_v63 = vrot.slane %v1306_v46, 5  ;;  %v1321_v33 = vld [vmem:[%s6999_s23 + $0x5c] sm:$0x1]  ;;  %v1322_v35 = vld [vmem:[%s6999_s23 + $0x60] sm:$0xe] }
  0x9a   : > { %v939_v61 = vsel %vm7046_vm4, %v934_v55, %v938_v39  ;;  %v5571_v62 = vcombine.low %v1400_v48, %v1403_v14  ;;  %6462 = vmatprep.mubr.msk.bf16.mxu0 %vm259_vm1, %v6913_v40  ;;  %v5557_v2 = vrot.slane %v1307_v47, 9  ;;  %v7501_v10 = vsel %vm7121_vm7, %v5556_v30, %v1413_v59  ;;  %v1323_v23 = vld [vmem:[%s6999_s23 + $0x64] sm:$0xf]  ;;  %v1324_v40 = vld [vmem:[%s6999_s23 + $0x68] sm:$0x1] }
  0x9b   : > { %v5537_v3 = vcombine.low %v929_v12, %v939_v61  ;;  %v7497_v5 = vsel %vm7121_vm7, %v1408_v58, %v1409_v50  ;;  %v1415_v11 = vrot.slane %v1413_v59, 4  ;;  %v1420_v29 = vrot.slane %v1308_v51, 5  ;;  %v1325_v41 = vld [vmem:[%s6999_s23 + $0x6c] sm:$0xe]  ;;  %v1326_v47 = vld [vmem:[%s6999_s23 + $0x70] sm:$0xf] }
  0x9c   : > { %v5572_v17 = vcombine.low %v7486_v57, %v7497_v5  ;;  %v1423_v34 = vrot.slane %v1309_v52, 5  ;;  %v5558_v19 = vrot.slane %v1310_v53, 9  ;;  %v1427_v24 = vrot.slane %v1311_v37, 5  ;;  %v1327_v55 = vld [vmem:[%s6999_s23 + $0x74] sm:$0x1]  ;;  %v6916_v58 = vld [vmem:[%s6999_s23 + $0x84] sm:$0xff]  }
  0x9d   : > { %v7510_v21 = vsel %vm7121_vm7, %v1415_v11, %v1416_v63  ;;  %v1430_v25 = vrot.slane %v1312_v28, 5  ;;  %v5559_v26 = vrot.slane %v1313_v1, 9  ;;  %6309 = vmatmul.mubr.msk.bf16.gmra.mrb[28].mxu1 %vm259_vm1, %v5537_v3  ;;  %v7519_v32 = vsel %vm7121_vm7, %v5557_v2, %v1420_v29  ;;  %v1328_v57 = vld [vmem:[%s6999_s23 + $0x78] sm:$0xe]  ;;  %v1330_v3 = vld [vmem:[%s6999_s23 + $0x80] sm:$0x1] }
  0x9e   : > { %v5573_v31 = vcombine.low %v7501_v10, %v7510_v21  ;;  %v1422_v54 = vrot.slane %v1420_v29, 4  ;;  %v1434_v6 = vrot.slane %v1314_v60, 5  ;;  %6314 = vmatprep.mubr.msk.bf16.mxu1 %vm259_vm1, %v5571_v62  ;;  %v7527_v36 = vsel %vm7121_vm7, %v5558_v19, %v1427_v24  ;;  %v1329_v62 = vld [vmem:[%s6999_s23 + $0x7c] sm:$0xf]  ;;  %v1331_v5 = vld [vmem:[%s6999_s23 + $0x84] sm:$0xe] }
  0x9f   : > { %v1429_v38 = vrot.slane %v1427_v24, 4  ;;  %v1437_v39 = vrot.slane %v1315_v15, 5  ;;  %v5560_v9 = vrot.slane %v1316_v8, 9  ;;  %v1441_v46 = vrot.slane %v1317_v13, 5  ;;  %v6917_v10 = vld [vmem:[%s6999_s23 + $0x90] sm:$0xff]  }
  0xa0   : > { %v7534_v42 = vsel %vm7121_vm7, %v1422_v54, %v1423_v34  ;;  %v7538_v44 = vsel %vm7121_vm7, %v5559_v26, %v1434_v6  ;;  %v1436_v45 = vrot.slane %v1434_v6, 4  ;;  %v1444_v49 = vrot.slane %v1318_v20, 5  ;;  %v1332_v34 = vld [vmem:[%s6999_s23 + $0x88] sm:$0xf]  ;;  %v5911_v24 = vld [vmem:[%s6999_s23 + $0x18] sm:$0xf] }
  0xa1   : > { %6463 = vmatmul.mubr.msk.bf16.gmra.mrb[12].mxu0 %vm259_vm1, %v6914_v18  ;;  %v5574_v48 = vcombine.low %v7519_v32, %v7534_v42  ;;  %v7546_v16 = vsel %vm7121_vm7, %v1429_v38, %v1430_v25  ;;  %v5561_v50 = vrot.slane %v1319_v27, 9  ;;  %v7557_v53 = vsel %vm7121_vm7, %v5560_v9, %v1441_v46  ;;  %v6056_v54 = vld [vmem:[%s8271_s1 + $0x10] sm:$0x3]  ;;  %v6939_v6 = vld [vmem:[%s8271_s1 + $0x8] sm:$0x3] }
  0xa2   : > { %6466 = vmatprep.mubr.msk.bf16.mxu0 %vm259_vm1, %v6915_v22  ;;  %v5575_v51 = vcombine.low %v7527_v36, %v7546_v16  ;;  %v7553_v52 = vsel %vm7121_vm7, %v1436_v45, %v1437_v39  ;;  %v1443_v12 = vrot.slane %v1441_v46, 4  ;;  %v1448_v37 = vrot.slane %v1320_v7, 5  ;;  %v1333_v22 = vld [vmem:[%s6999_s23 + $0x8c] sm:$0x1]  ;;  %v5913_v39 = vld [vmem:[%s6999_s23 + $0x20] sm:$0x1]  ;;  %6881 = vmatprep.subr.msk.bf16.mxu0 %vm308_vm0, %v6056_v54 }
  0xa3   : > { %v5576_v30 = vcombine.low %v7538_v44, %v7553_v52  ;;  %v1451_v28 = vrot.slane %v1321_v33, 5  ;;  %v5562_v14 = vrot.slane %v1322_v35, 9  ;;  %v1455_v1 = vrot.slane %v1323_v23, 5  ;;  %v5914_v45 = vld [vmem:[%s6999_s23 + $0x24] sm:$0xf] }
  0xa4   : > { %v7566_v59 = vsel %vm7121_vm7, %v1443_v12, %v1444_v49  ;;  %v1458_v60 = vrot.slane %v1324_v40, 5  ;;  %v5563_v61 = vrot.slane %v1325_v41, 9  ;;  %v7573_v2 = vsel %vm7121_vm7, %v5561_v50, %v1448_v37  ;;  %v5915_v12 = vld [vmem:[%s6999_s23 + $0x28] sm:$0xf] }
  0xa5   : > { %v5577_v63 = vcombine.low %v7557_v53, %v7566_v59  ;;  %v1450_v15 = vrot.slane %v1448_v37, 4  ;;  %v1462_v8 = vrot.slane %v1326_v47, 5  ;;  %6315 = vmatmul.mubr.msk.bf16.vlgmr.msra.gmra.mrb[0].mxu1 %vm259_vm1, %v5572_v17  ;;  %v7581_v11 = vsel %vm7121_vm7, %v5562_v14, %v1455_v1 }
  0xa6   : > { %v1457_v13 = vrot.slane %v1455_v1, 4  ;;  %v1465_v18 = vrot.slane %v1327_v55, 5  ;;  %v5564_v29 = vrot.slane %v1328_v57, 9  ;;  %6347 = vmatpush3.bf16.msra.mxu1 %v7477_v56  ;;  %6318 = vmatprep.mubr.msk.bf16.mxu1 %vm259_vm1, %v5573_v31  ;;  %v1469_v21 = vrot.slane %v1329_v62, 5  ;;  %v5912_v31 = vld [vmem:[%s6999_s23 + $0x1c] sm:$0xf] }
  0xa7   : > { %v7588_v19 = vsel %vm7121_vm7, %v1450_v15, %v1451_v28  ;;  %v7592_v17 = vsel %vm7121_vm7, %v5563_v61, %v1462_v8  ;;  %v1464_v20 = vrot.slane %v1462_v8, 4  ;;  %v1472_v26 = vrot.slane %v1330_v3, 5  ;;  %6877 = vmatprep.subr.msk.bf16.mxu1 %vm308_vm0, %v6939_v6  ;;  %v6918_v55 = vld [vmem:[%s6999_s23 + $0x9c] sm:$0xff]   ;;  %v5916_v62 = vld [vmem:[%s6999_s23 + $0x2c] sm:$0x1] }
  0xa8   : > { %v5578_v25 = vcombine.low %v7573_v2, %v7588_v19  ;;  %v7600_v56 = vsel %vm7121_vm7, %v1457_v13, %v1458_v60  ;;  %v5565_v27 = vrot.slane %v1331_v5, 9  ;;  %v7619_v35 = vsel %vm7121_vm7, %v5564_v29, %v1469_v21  ;;  %v6919_v15 = vld [vmem:[%s6999_s23 + $0xa8] sm:$0xff]   ;;  %v1334_v13 = vld [vmem:[%s6999_s23 + $0x90] sm:$0xe]  ;;  %v1335_v29 = vld [vmem:[%s6999_s23 + $0x94] sm:$0xf] }
  0xa9   : > { %6467 = vmatmul.mubr.msk.bf16.gmra.mrb[16].mxu0 %vm259_vm1, %v6916_v58  ;;  %v5579_v7 = vcombine.low %v7581_v11, %v7600_v56  ;;  %v7615_v33 = vsel %vm7121_vm7, %v1464_v20, %v1465_v18  ;;  %v1471_v38 = vrot.slane %v1469_v21, 4  ;;  %v1476_v23 = vrot.slane %v1332_v34, 5  ;;  %v1336_v34 = vld [vmem:[%s6999_s23 + $0x98] sm:$0x1]  ;;  %v5923_v2 = vld [vmem:[%s6999_s23 + $0x48] sm:$0xf] }
  0xaa   : > { %6470 = vmatprep.mubr.msk.bf16.mxu0 %vm259_vm1, %v6917_v10  ;;  %v5580_v9 = vcombine.low %v7592_v17, %v7615_v33  ;;  %v1479_v40 = vrot.slane %v1333_v22, 5  ;;  %v4118_v41 = vshrl.u32 %v5911_v24, 16  ;;  %v4121_v47 = vshll.u32 %v5911_v24, 16 }
  0xab   : > { %v7629_v46 = vsel %vm7121_vm7, %v1471_v38, %v1472_v26  ;;  %v4127_v49 = vshll.u32 %v5912_v31, 16  ;;  %v4131_v50 = vshrl.u32 %v5912_v31, 16  ;;  %v7637_v28 = vsel %vm7121_vm7, %v5565_v27, %v1476_v23  ;;  %v1337_v26 = vld [vmem:[%s6999_s23 + $0x9c] sm:$0xe]  ;;  %v1338_v31 = vld [vmem:[%s6999_s23 + $0xa0] sm:$0xf] }
  0xac   : > { %v5581_v37 = vcombine.low %v7619_v35, %v7629_v46  ;;  %v1478_v14 = vrot.slane %v1476_v23, 4  ;;  %v4120_v57 = vrot.slane %v4118_v41, 4  ;;  %v4123_v58 = vrot.slane %v4121_v47, 5  ;;  %v5931_v35 = vld [vmem:[%s6999_s23 + $0x68] sm:$0x1] }
  0xad   : > { %v4129_v1 = vrot.slane %v4127_v49, 5  ;;  %v4133_v60 = vrot.slane %v4131_v50, 4  ;;  %v4137_v61 = vshll.u32 %v5913_v39, 16  ;;  %6319 = vmatmul.mubr.msk.bf16.gmra.mrb[4].mxu1 %vm259_vm1, %v5574_v48  ;;  %v4142_v3 = vshrl.u32 %v5914_v45, 16  ;;  %v5917_v49 = vld [vmem:[%s6999_s23 + $0x30] sm:$0xf] }
  0xae   : > { %v7647_v8 = vsel %vm7121_vm7, %v1478_v14, %v1479_v40  ;;  %v4145_v5 = vshll.u32 %v5914_v45, 16  ;;  %v4151_v10 = vshll.u32 %v5915_v12, 16  ;;  %6322 = vmatprep.mubr.msk.bf16.mxu1 %vm259_vm1, %v5575_v51  ;;  %v4124_v42 = vor.u32 %v4123_v58, %v4120_v57  ;;  %v1339_v40 = vld [vmem:[%s6999_s23 + $0xa4] sm:$0x1]  ;;  %v5918_v57 = vld [vmem:[%s6999_s23 + $0x34] sm:$0xf] }
  0xaf   : > { %v5582_v32 = vcombine.low %v7637_v28, %v7647_v8  ;;  %v4134_v48 = vor.u32 %v4133_v60, %v4129_v1  ;;  %v4139_v18 = vrot.slane %v4137_v61, 5  ;;  %v4144_v20 = vrot.slane %v4142_v3, 4  ;;  %v6920_v58 = vld [vmem:[%s6999_s23 + $0xb4] sm:$0xff]  }
  0xb0   : > { %v4147_v21 = vrot.slane %v4145_v5, 5  ;;  %v4153_v22 = vrot.slane %v4151_v10, 5  ;;  %v4155_v24 = vshrl.u32 %v5915_v12, 16  ;;  %v4125_v36 = vrot.slane %v4124_v42, 4 }
  0xb1   : > { %6471 = vmatmul.mubr.msk.bf16.gmra.mrb[20].mxu0 %vm259_vm1, %v6918_v55  ;;  %v4135_v16 = vrot.slane %v4134_v48, 4  ;;  %v4161_v51 = vshll.u32 %v5916_v62, 16  ;;  %v7661_v27 = vsel %vm308_vm0, %v6056_v54, 0  ;;  %v5566_v39 = vrot.slane %v1334_v13, 9 }
  0xb2   : > { %6474 = vmatprep.mubr.msk.bf16.mxu0 %vm259_vm1, %v6919_v15  ;;  %v4148_v6 = vor.u32 %v4147_v21, %v4144_v20  ;;  %v4157_v38 = vrot.slane %v4155_v24, 4  ;;  %v1483_v23 = vrot.slane %v1335_v29, 5  ;;  %v4130_v41 = vsel %vm7046_vm4, %v4125_v36, %v4129_v1  ;;  %v6921_v15 = vld [vmem:[%s6999_s23 + $0xc0] sm:$0xff]   ;;  %v1340_v36 = vld [vmem:[%s6999_s23 + $0xa8] sm:$0xe] }
  0xb3   : > { %v4140_v45 = vsel %vm7046_vm4, %v4135_v16, %v4139_v18  ;;  %v4163_v47 = vrot.slane %v4161_v51, 5  ;;  %v1486_v54 = vrot.slane %v1336_v34, 5  ;;  %v5567_v1 = vrot.slane %v1337_v26, 9  ;;  %v5920_v18 = vld [vmem:[%s6999_s23 + $0x3c] sm:$0xf] }
  0xb4   : > { %v7671_v50 = vcombine.low %v4130_v41, %v4140_v45  ;;  %v4149_v12 = vrot.slane %v4148_v6, 4  ;;  %v4158_v55 = vor.u32 %v4157_v38, %v4153_v22  ;;  %v7675_v14 = vsel %vm7121_vm7, %v5566_v39, %v1483_v23  ;;  %v5921_v34 = vld [vmem:[%s6999_s23 + $0x40] sm:$0xf]  ;;  %v5922_v26 = vld [vmem:[%s6999_s23 + $0x44] sm:$0x1] }
  0xb5   : > { %v1485_v60 = vrot.slane %v1483_v23, 4  ;;  %v1490_v61 = vrot.slane %v1338_v31, 5  ;;  %v1493_v62 = vrot.slane %v1339_v40, 5  ;;  %6323 = vmatmul.mubr.msk.bf16.gmra.mrb[8].mxu1 %vm259_vm1, %v5576_v30  ;;  %v4166_v10 = vshrl.u32 %v5917_v49, 16  ;;  %v5919_v30 = vld [vmem:[%s6999_s23 + $0x38] sm:$0x1] }
  0xb6   : > { %v4154_v3 = vsel %vm7046_vm4, %v4149_v12, %v4153_v22  ;;  %v4159_v5 = vrot.slane %v4158_v55, 4  ;;  %v4169_v13 = vshll.u32 %v5917_v49, 16  ;;  %6326 = vmatprep.mubr.msk.bf16.mxu1 %vm259_vm1, %v5577_v63  ;;  %v4175_v48 = vshll.u32 %v5918_v57, 16  ;;  %v1341_v38 = vld [vmem:[%s6999_s23 + $0xac] sm:$0xf] }
  0xb7   : > { %v7692_v42 = vsel %vm7121_vm7, %v1485_v60, %v1486_v54  ;;  %v7696_v44 = vsel %vm7121_vm7, %v5567_v1, %v1490_v61  ;;  %v1492_v52 = vrot.slane %v1490_v61, 4  ;;  %v4168_v59 = vrot.slane %v4166_v10, 4  ;;  %v1342_v39 = vld [vmem:[%s6999_s23 + $0xb0] sm:$0x1]  ;;  %v1344_v54 = vld [vmem:[%s6999_s23 + $0xb8] sm:$0xf] }
  0xb8   : > { %v4164_v29 = vsel %vm7046_vm4, %v4159_v5, %v4163_v47  ;;  %v5583_v53 = vcombine.low %v7675_v14, %v7692_v42  ;;  %v4171_v63 = vrot.slane %v4169_v13, 5  ;;  %v4177_v22 = vrot.slane %v4175_v48, 5  ;;  %v1343_v47 = vld [vmem:[%s6999_s23 + $0xb4] sm:$0xe]  ;;  %v6922_v60 = vld [vmem:[%s6999_s23 + $0xcc] sm:$0xff]  }
  0xb9   : > { %6475 = vmatmul.mubr.msk.bf16.gmra.mrb[24].mxu0 %vm259_vm1, %v6920_v58  ;;  %v7706_v20 = vcombine.low %v4154_v3, %v4164_v29  ;;  %v7710_v21 = vsel %vm7121_vm7, %v1492_v52, %v1493_v62  ;;  %v4179_v24 = vshrl.u32 %v5918_v57, 16  ;;  %v4185_v31 = vshll.u32 %v5919_v30, 16  ;;  %v1345_v58 = vld [vmem:[%s6999_s23 + $0xbc] sm:$0x1] }
  0xba   : > { %6478 = vmatprep.mubr.msk.bf16.mxu0 %vm259_vm1, %v6921_v15  ;;  %v5584_v16 = vcombine.low %v7696_v44, %v7710_v21  ;;  %v4172_v51 = vor.u32 %v4171_v63, %v4168_v59  ;;  %v4190_v6 = vshrl.u32 %v5920_v18, 16  ;;  %v4193_v40 = vshll.u32 %v5920_v18, 16  ;;  %v5924_v63 = vld [vmem:[%s6999_s23 + $0x4c] sm:$0xf] }
  0xbb   : > { %v4181_v23 = vrot.slane %v4179_v24, 4  ;;  %v4199_v41 = vshll.u32 %v5921_v34, 16  ;;  %v4203_v45 = vshrl.u32 %v5921_v34, 16  ;;  %v4187_v12 = vrot.slane %v4185_v31, 5  ;;  %v5926_v31 = vld [vmem:[%s6999_s23 + $0x54] sm:$0xf] }
  0xbc   : > { %v4173_v49 = vrot.slane %v4172_v51, 4  ;;  %v4192_v55 = vrot.slane %v4190_v6, 4  ;;  %v4209_v57 = vshll.u32 %v5922_v26, 16  ;;  %v4195_v61 = vrot.slane %v4193_v40, 5  ;;  %v5927_v6 = vld [vmem:[%s6999_s23 + $0x58] sm:$0xf] }
  0xbd   : > { %v4182_v1 = vor.u32 %v4181_v23, %v4177_v22  ;;  %v4201_v62 = vrot.slane %v4199_v41, 5  ;;  %v4205_v15 = vrot.slane %v4203_v45, 4  ;;  %6327 = vmatmul.mubr.msk.bf16.gmra.mrb[12].mxu1 %vm259_vm1, %v5578_v25  ;;  %v5568_v10 = vrot.slane %v1340_v36, 9  ;;  %v5940_v44 = vld [vmem:[%s6999_s23 + $0x8c] sm:$0x1] }
  0xbe   : > { %v4178_v3 = vsel %vm7046_vm4, %v4173_v49, %v4177_v22  ;;  %v4211_v5 = vrot.slane %v4209_v57, 5  ;;  %v1497_v13 = vrot.slane %v1341_v38, 5  ;;  %6330 = vmatprep.mubr.msk.bf16.mxu1 %vm259_vm1, %v5579_v7  ;;  %v4196_v30 = vor.u32 %v4195_v61, %v4192_v55  ;;  %v5925_v22 = vld [vmem:[%s6999_s23 + $0x50] sm:$0x1]  ;;  %v5928_v57 = vld [vmem:[%s6999_s23 + $0x5c] sm:$0x1] }
  0xbf   : > { %v4183_v52 = vrot.slane %v4182_v1, 4  ;;  %v4206_v48 = vor.u32 %v4205_v15, %v4201_v62  ;;  %v1500_v18 = vrot.slane %v1342_v39, 5  ;;  %v5569_v29 = vrot.slane %v1343_v47, 9 }
  0xc0   : > { %v7736_v19 = vsel %vm7121_vm7, %v5568_v10, %v1497_v13  ;;  %v1499_v25 = vrot.slane %v1497_v13, 4  ;;  %v1504_v59 = vrot.slane %v1344_v54, 5  ;;  %v4197_v56 = vrot.slane %v4196_v30, 4 }
  0xc1   : > { %6479 = vmatmul.mubr.msk.bf16.gmra.mrb[28].mxu0 %vm259_vm1, %v6922_v60  ;;  %v4188_v11 = vsel %vm7046_vm4, %v4183_v52, %v4187_v12  ;;  %v4207_v7 = vrot.slane %v4206_v48, 4  ;;  %v1507_v34 = vrot.slane %v1345_v58, 5  ;;  %v4214_v23 = vshrl.u32 %v5923_v2, 16  ;;  %v5930_v52 = vld [vmem:[%s6999_s23 + $0x64] sm:$0xf] }
  0xc2   : > { %6484 = vmatprep.mubr.msk.bf16.mxu0 %vm259_vm1, %v7671_v50  ;;  %v5962_v24 = vcombine.low %v4178_v3, %v4188_v11  ;;  %v7747_v26 = vsel %vm7121_vm7, %v1499_v25, %v1500_v18  ;;  %v7751_v36 = vsel %vm7121_vm7, %v5569_v29, %v1504_v59  ;;  %v1506_v51 = vrot.slane %v1504_v59, 4  ;;  %v5932_v59 = vld [vmem:[%s6999_s23 + $0x6c] sm:$0xf] }
  0xc3   : > { %v4202_v38 = vsel %vm7046_vm4, %v4197_v56, %v4201_v62  ;;  %v4212_v39 = vsel %vm7046_vm4, %v4207_v7, %v4211_v5  ;;  %v5585_v50 = vcombine.low %v7736_v19, %v7747_v26  ;;  %v4217_v45 = vshll.u32 %v5923_v2, 16  ;;  %v5929_v62 = vld [vmem:[%s6999_s23 + $0x60] sm:$0xf]  ;;  %v5933_v7 = vld [vmem:[%s6999_s23 + $0x70] sm:$0xf] }
  0xc4   : > { %v7761_v40 = vcombine.low %v4202_v38, %v4212_v39  ;;  %v7765_v41 = vsel %vm7121_vm7, %v1506_v51, %v1507_v34  ;;  %v4223_v47 = vshll.u32 %v5924_v63, 16  ;;  %v4216_v49 = vrot.slane %v4214_v23, 4 }
  0xc5   : > { %v5586_v54 = vcombine.low %v7751_v36, %v7765_v41  ;;  %v4227_v12 = vshrl.u32 %v5924_v63, 16  ;;  %v4233_v55 = vshll.u32 %v5925_v22, 16  ;;  %6331 = vmatmul.mubr.msk.bf16.gmra.mrb[16].mxu1 %vm259_vm1, %v5580_v9  ;;  %v4219_v58 = vrot.slane %v4217_v45, 5 }
  0xc6   : > { %v4225_v60 = vrot.slane %v4223_v47, 5  ;;  %v4238_v1 = vshrl.u32 %v5926_v31, 16  ;;  %v4241_v61 = vshll.u32 %v5926_v31, 16  ;;  %6334 = vmatprep.mubr.msk.bf16.mxu1 %vm259_vm1, %v5581_v37  ;;  %v4247_v5 = vshll.u32 %v5927_v6, 16 }
  0xc7   : > { %v4229_v15 = vrot.slane %v4227_v12, 4  ;;  %v4235_v3 = vrot.slane %v4233_v55, 5  ;;  %v4251_v10 = vshrl.u32 %v5927_v6, 16  ;;  %v4220_v13 = vor.u32 %v4219_v58, %v4216_v49  ;;  %v5934_v49 = vld [vmem:[%s6999_s23 + $0x74] sm:$0x1] }
  0xc8   : > { %v4240_v17 = vrot.slane %v4238_v1, 4  ;;  %v4243_v33 = vrot.slane %v4241_v61, 5  ;;  %v4257_v9 = vshll.u32 %v5928_v57, 16  ;;  %v4249_v48 = vrot.slane %v4247_v5, 5  ;;  %v5935_v55 = vld [vmem:[%s6999_s23 + $0x78] sm:$0xf] }
  0xc9   : > { %6485 = vmatmul.mubr.msk.bf16.vlgmr.msra.gmra.mrb[0].mxu0 %vm259_vm1, %v7706_v20  ;;  %v4230_v30 = vor.u32 %v4229_v15, %v4225_v60  ;;  %v4253_v18 = vrot.slane %v4251_v10, 4  ;;  %v4262_v46 = vshrl.u32 %v5929_v62, 16  ;;  %v4221_v37 = vrot.slane %v4220_v13, 4  ;;  %v5936_v61 = vld [vmem:[%s6999_s23 + $0x7c] sm:$0xf] }
  0xca   : > { %6517 = vmatpush3.bf16.msra.mxu0 %v7661_v27  ;;  %6488 = vmatprep.mubr.msk.bf16.mxu0 %vm259_vm1, %v5962_v24  ;;  %v4244_v2 = vor.u32 %v4243_v33, %v4240_v17  ;;  %v4259_v25 = vrot.slane %v4257_v9, 5  ;;  %v4265_v29 = vshll.u32 %v5929_v62, 16  ;;  %v4271_v20 = vshll.u32 %v5930_v52, 16  ;;  %v5937_v15 = vld [vmem:[%s6999_s23 + $0x80] sm:$0x1] }
  0xcb   : > { %v4231_v63 = vrot.slane %v4230_v30, 4  ;;  %v4254_v11 = vor.u32 %v4253_v18, %v4249_v48  ;;  %v4264_v56 = vrot.slane %v4262_v46, 4  ;;  %v4226_v34 = vsel %vm7046_vm4, %v4221_v37, %v4225_v60  ;;  %v5938_v17 = vld [vmem:[%s6999_s23 + $0x84] sm:$0xf] }
  0xcc   : > { %v4245_v22 = vrot.slane %v4244_v2, 4  ;;  %v4267_v51 = vrot.slane %v4265_v29, 5  ;;  %v4275_v31 = vshrl.u32 %v5930_v52, 16  ;;  %v4273_v6 = vrot.slane %v4271_v20, 5 }
  0xcd   : > { %v4236_v27 = vsel %vm7046_vm4, %v4231_v63, %v4235_v3  ;;  %v4255_v24 = vrot.slane %v4254_v11, 4  ;;  %v4281_v38 = vshll.u32 %v5931_v35, 16  ;;  %6335 = vmatmul.mubr.msk.bf16.gmra.mrb[20].mxu1 %vm259_vm1, %v5582_v32  ;;  %v4286_v8 = vshrl.u32 %v5932_v59, 16 }
  0xce   : > { %v5964_v39 = vcombine.low %v4226_v34, %v4236_v27  ;;  %v4250_v23 = vsel %vm7046_vm4, %v4245_v22, %v4249_v48  ;;  %v4268_v45 = vor.u32 %v4267_v51, %v4264_v56  ;;  %v4277_v47 = vrot.slane %v4275_v31, 4  ;;  %6338 = vmatprep.mubr.msk.bf16.mxu1 %vm259_vm1, %v5583_v53 }
  0xcf   : > { %v4260_v12 = vsel %vm7046_vm4, %v4255_v24, %v4259_v25  ;;  %v4283_v28 = vrot.slane %v4281_v38, 5  ;;  %v4289_v32 = vshll.u32 %v5932_v59, 16  ;;  %v4295_v1 = vshll.u32 %v5933_v7, 16  ;;  %v5942_v24 = vld [vmem:[%s6999_s23 + $0x94] sm:$0xf] }
  0xd0   : > { %v5965_v57 = vcombine.low %v4250_v23, %v4260_v12  ;;  %v4269_v58 = vrot.slane %v4268_v45, 4  ;;  %v4278_v60 = vor.u32 %v4277_v47, %v4273_v6  ;;  %v4288_v14 = vrot.slane %v4286_v8, 4  ;;  %v5943_v38 = vld [vmem:[%s6999_s23 + $0x98] sm:$0x1]  ;;  %v5944_v12 = vld [vmem:[%s6999_s23 + $0x9c] sm:$0xf] }
  0xd1   : > { %6489 = vmatmul.mubr.msk.bf16.gmra.mrb[4].mxu0 %vm259_vm1, %v7761_v40  ;;  %v4291_v42 = vrot.slane %v4289_v32, 5  ;;  %v4299_v53 = vshrl.u32 %v5933_v7, 16  ;;  %v4305_v62 = vshll.u32 %v5934_v49, 16  ;;  %v4297_v10 = vrot.slane %v4295_v1, 5  ;;  %v5939_v40 = vld [vmem:[%s6999_s23 + $0x88] sm:$0xf] }
  0xd2   : > { %6492 = vmatprep.mubr.msk.bf16.mxu0 %vm259_vm1, %v5964_v39  ;;  %v4274_v3 = vsel %vm7046_vm4, %v4269_v58, %v4273_v6  ;;  %v4279_v5 = vrot.slane %v4278_v60, 4  ;;  %v4310_v13 = vshrl.u32 %v5935_v55, 16  ;;  %v4313_v30 = vshll.u32 %v5935_v55, 16  ;;  %v6923_v39 = vld [vmem:[%s6999_s23 + $0xc] sm:$0xff]  }
  0xd3   : > { %v4292_v33 = vor.u32 %v4291_v42, %v4288_v14  ;;  %v4301_v9 = vrot.slane %v4299_v53, 4  ;;  %v4307_v52 = vrot.slane %v4305_v62, 5  ;;  %v4319_v35 = vshll.u32 %v5936_v61, 16  ;;  %v5945_v62 = vld [vmem:[%s6999_s23 + $0xa0] sm:$0xf] }
  0xd4   : > { %v4284_v48 = vsel %vm7046_vm4, %v4279_v5, %v4283_v28  ;;  %v4312_v18 = vrot.slane %v4310_v13, 4  ;;  %v4323_v46 = vshrl.u32 %v5936_v61, 16  ;;  %v4315_v29 = vrot.slane %v4313_v30, 5 }
  0xd5   : > { %v5966_v37 = vcombine.low %v4274_v3, %v4284_v48  ;;  %v4293_v2 = vrot.slane %v4292_v33, 4  ;;  %v4302_v25 = vor.u32 %v4301_v9, %v4297_v10  ;;  %6339 = vmatmul.mubr.msk.bf16.gmra.mrb[24].mxu1 %vm259_vm1, %v5584_v16  ;;  %v4321_v59 = vrot.slane %v4319_v35, 5  ;;  %v5941_v16 = vld [vmem:[%s6999_s23 + $0x90] sm:$0xf]  ;;  %v5946_v33 = vld [vmem:[%s6999_s23 + $0xa4] sm:$0x1] }
  0xd6   : > { %v4325_v63 = vrot.slane %v4323_v46, 4  ;;  %v4329_v11 = vshll.u32 %v5937_v15, 16  ;;  %v4334_v56 = vshrl.u32 %v5938_v17, 16  ;;  %6342 = vmatprep.mubr.msk.bf16.mxu1 %vm259_vm1, %v5585_v50  ;;  %v4316_v34 = vor.u32 %v4315_v29, %v4312_v18  ;;  %v6924_v48 = vld [vmem:[%s6999_s23 + $0x18] sm:$0xff]  }
  0xd7   : > { %v4298_v20 = vsel %vm7046_vm4, %v4293_v2, %v4297_v10  ;;  %v4303_v7 = vrot.slane %v4302_v25, 4  ;;  %v4337_v21 = vshll.u32 %v5938_v17, 16  ;;  %v4343_v27 = vshll.u32 %v5939_v40, 16  ;;  %v5948_v2 = vld [vmem:[%s6999_s23 + $0xac] sm:$0xf] }
  0xd8   : > { %v4326_v22 = vor.u32 %v4325_v63, %v4321_v59  ;;  %v4331_v51 = vrot.slane %v4329_v11, 5  ;;  %v4336_v31 = vrot.slane %v4334_v56, 4  ;;  %v4317_v26 = vrot.slane %v4316_v34, 4  ;;  %v5949_v11 = vld [vmem:[%s6999_s23 + $0xb0] sm:$0x1]  ;;  %v6925_v56 = vld [vmem:[%s6999_s23 + $0x24] sm:$0xff]  }
  0xd9   : > { %6493 = vmatmul.mubr.msk.bf16.gmra.mrb[8].mxu0 %vm259_vm1, %v5965_v57  ;;  %v4308_v19 = vsel %vm7046_vm4, %v4303_v7, %v4307_v52  ;;  %v4339_v50 = vrot.slane %v4337_v21, 5  ;;  %v4347_v6 = vshrl.u32 %v5939_v40, 16  ;;  %v4345_v47 = vrot.slane %v4343_v27, 5  ;;  %v5947_v40 = vld [vmem:[%s6999_s23 + $0xa8] sm:$0xf] }
  0xda   : > { %6496 = vmatprep.mubr.msk.bf16.mxu0 %vm259_vm1, %v5966_v37  ;;  %v5967_v23 = vcombine.low %v4298_v20, %v4308_v19  ;;  %v4327_v45 = vrot.slane %v4326_v22, 4  ;;  %v4353_v49 = vshll.u32 %v5940_v44, 16  ;;  %v4322_v28 = vsel %vm7046_vm4, %v4317_v26, %v4321_v59  ;;  %v5950_v21 = vld [vmem:[%s6999_s23 + $0xb4] sm:$0xf] }
  0xdb   : > { %v4340_v8 = vor.u32 %v4339_v50, %v4336_v31  ;;  %v4349_v32 = vrot.slane %v4347_v6, 4  ;;  %v4358_v55 = vshrl.u32 %v5941_v16, 16  ;;  %v4361_v60 = vshll.u32 %v5941_v16, 16 }
  0xdc   : > { %v4332_v57 = vsel %vm7046_vm4, %v4327_v45, %v4331_v51  ;;  %v4355_v58 = vrot.slane %v4353_v49, 5  ;;  %v4367_v1 = vshll.u32 %v5942_v24, 16  ;;  %v4371_v5 = vshrl.u32 %v5942_v24, 16 }
  0xdd   : > { %v5968_v61 = vcombine.low %v4322_v28, %v4332_v57  ;;  %v4341_v14 = vrot.slane %v4340_v8, 4  ;;  %v4350_v42 = vor.u32 %v4349_v32, %v4345_v47  ;;  %v4360_v53 = vrot.slane %v4358_v55, 4  ;;  %6343 = vmatmul.mubr.msk.bf16.gmra.mrb[28].mxu1 %vm259_vm1, %v5586_v54  ;;  %v6926_v28 = vld [vmem:[%s6999_s23 + $0x30] sm:$0xff]   ;;  %v5952_v55 = vld [vmem:[%s6999_s23 + $0xbc] sm:$0x1] }
  0xde   : > { %v4363_v15 = vrot.slane %v4361_v60, 5  ;;  %v4369_v3 = vrot.slane %v4367_v1, 5  ;;  %v4377_v10 = vshll.u32 %v5943_v38, 16  ;;  %6348 = vmatprep.mubr.msk.bf16.mxu1 %vm259_vm1, %v6923_v39  ;;  %v4382_v9 = vshrl.u32 %v5944_v12, 16  ;;  %v6927_v60 = vld [vmem:[%s6999_s23 + $0x3c] sm:$0xff]  }
  0xdf   : > { %v4346_v13 = vsel %vm7046_vm4, %v4341_v14, %v4345_v47  ;;  %v4351_v17 = vrot.slane %v4350_v42, 4  ;;  %v4385_v52 = vshll.u32 %v5944_v12, 16  ;;  %v4373_v36 = vrot.slane %v4371_v5, 4  ;;  %v5953_v42 = vld [vmem:[%s6999_s23 + $0xc0] sm:$0xf] }
  0xe0   : > { %v4364_v30 = vor.u32 %v4363_v15, %v4360_v53  ;;  %v4379_v41 = vrot.slane %v4377_v10, 5  ;;  %v4391_v54 = vshll.u32 %v5945_v62, 16  ;;  %v4384_v35 = vrot.slane %v4382_v9, 4  ;;  %v5954_v5 = vld [vmem:[%s6999_s23 + $0xc4] sm:$0xf] }
  0xe1   : > { %6497 = vmatmul.mubr.msk.bf16.gmra.mrb[12].mxu0 %vm259_vm1, %v5967_v23  ;;  %v4356_v18 = vsel %vm7046_vm4, %v4351_v17, %v4355_v58  ;;  %v4387_v46 = vrot.slane %v4385_v52, 5  ;;  %v4395_v37 = vshrl.u32 %v5945_v62, 16  ;;  %v4374_v59 = vor.u32 %v4373_v36, %v4369_v3  ;;  %v5951_v23 = vld [vmem:[%s6999_s23 + $0xb8] sm:$0xf]  ;;  %v5955_v9 = vld [vmem:[%s6999_s23 + $0xc8] sm:$0x1] }
  0xe2   : > { %6500 = vmatprep.mubr.msk.bf16.mxu0 %vm259_vm1, %v5968_v61  ;;  %v5969_v25 = vcombine.low %v4346_v13, %v4356_v18  ;;  %v4365_v29 = vrot.slane %v4364_v30, 4  ;;  %v4393_v63 = vrot.slane %v4391_v54, 5  ;;  %v4401_v34 = vshll.u32 %v5946_v33, 16 }
  0xe3   : > { %v4388_v20 = vor.u32 %v4387_v46, %v4384_v35  ;;  %v4397_v7 = vrot.slane %v4395_v37, 4  ;;  %v4406_v44 = vshrl.u32 %v5947_v40, 16  ;;  %v4375_v22 = vrot.slane %v4374_v59, 4  ;;  %v5956_v35 = vld [vmem:[%s6999_s23 + $0xcc] sm:$0xf] }
  0xe4   : > { %v4370_v16 = vsel %vm7046_vm4, %v4365_v29, %v4369_v3  ;;  %v4409_v51 = vshll.u32 %v5947_v40, 16  ;;  %v4415_v31 = vshll.u32 %v5948_v2, 16  ;;  %v4403_v19 = vrot.slane %v4401_v34, 5  ;;  %v5957_v29 = vld [vmem:[%s6999_s23 + $0xd0] sm:$0xf] }
  0xe5   : > { %v4389_v27 = vrot.slane %v4388_v20, 4  ;;  %v4398_v24 = vor.u32 %v4397_v7, %v4393_v63  ;;  %v4408_v26 = vrot.slane %v4406_v44, 4  ;;  %6349 = vmatmul.mubr.msk.bf16.vlgmr.msra.gmra.mrb[0].mxu1 %vm259_vm1, %v6924_v48  ;;  %v4380_v50 = vsel %vm7046_vm4, %v4375_v22, %v4379_v41  ;;  %v5958_v20 = vld [vmem:[%s6999_s23 + $0xd4] sm:$0x1]  ;;  %v6928_v7 = vld [vmem:[%s6999_s23 + $0x48] sm:$0xff]  }
  0xe6   : > { %v4411_v6 = vrot.slane %v4409_v51, 5  ;;  %v4417_v38 = vrot.slane %v4415_v31, 5  ;;  %v4419_v39 = vshrl.u32 %v5948_v2, 16  ;;  %6551 = vmatpush3.bf16.msra.mxu1 %v6988_v4  ;;  %6352 = vmatprep.mubr.msk.bf16.mxu1 %vm259_vm1, %v6925_v56  ;;  %v5970_v45 = vcombine.low %v4370_v16, %v4380_v50  ;;  %v5992_v22 = vld [vmem:[%s6999_s23 + $0x18] sm:$0xe] }
  0xe7   : > { %v4394_v47 = vsel %vm7046_vm4, %v4389_v27, %v4393_v63  ;;  %v4399_v49 = vrot.slane %v4398_v24, 4  ;;  %v4425_v12 = vshll.u32 %v5949_v11, 16  ;;  %v4430_v57 = vshrl.u32 %v5950_v21, 16  ;;  %v5993_v51 = vld [vmem:[%s6999_s23 + $0x1c] sm:$0xf]  ;;  %v6929_v31 = vld [vmem:[%s6999_s23 + $0x54] sm:$0xff]  }
  0xe8   : > { %v4412_v8 = vor.u32 %v4411_v6, %v4408_v26  ;;  %v4421_v32 = vrot.slane %v4419_v39, 4  ;;  %v4433_v58 = vshll.u32 %v5950_v21, 16  ;;  %v4439_v61 = vshll.u32 %v5951_v23, 16  ;;  %v5994_v50 = vld [vmem:[%s6999_s23 + $0x20] sm:$0x1] }
  0xe9   : > { %6501 = vmatmul.mubr.msk.bf16.gmra.mrb[16].mxu0 %vm259_vm1, %v5969_v25  ;;  %v4404_v4 = vsel %vm7046_vm4, %v4399_v49, %v4403_v19  ;;  %v4427_v1 = vrot.slane %v4425_v12, 5  ;;  %v4443_v14 = vshrl.u32 %v5951_v23, 16  ;;  %v4432_v3 = vrot.slane %v4430_v57, 4  ;;  %v5996_v6 = vld [vmem:[%s6999_s23 + $0x28] sm:$0xf] }
  0xea   : > { %6504 = vmatprep.mubr.msk.bf16.mxu0 %vm259_vm1, %v5970_v45  ;;  %v5971_v53 = vcombine.low %v4394_v47, %v4404_v4  ;;  %v4413_v62 = vrot.slane %v4412_v8, 4  ;;  %v4422_v15 = vor.u32 %v4421_v32, %v4417_v38  ;;  %v4435_v10 = vrot.slane %v4433_v58, 5  ;;  %v5995_v45 = vld [vmem:[%s6999_s23 + $0x24] sm:$0xe]  ;;  %v5997_v58 = vld [vmem:[%s6999_s23 + $0x2c] sm:$0x1] }
  0xeb   : > { %v4441_v13 = vrot.slane %v4439_v61, 5  ;;  %v4445_v17 = vrot.slane %v4443_v14, 4  ;;  %v4449_v33 = vshll.u32 %v5952_v55, 16  ;;  %v4454_v36 = vshrl.u32 %v5953_v42, 16  ;;  %v5998_v14 = vld [vmem:[%s6999_s23 + $0x30] sm:$0xe] }
  0xec   : > { %v4418_v52 = vsel %vm7046_vm4, %v4413_v62, %v4417_v38  ;;  %v4423_v30 = vrot.slane %v4422_v15, 4  ;;  %v4457_v41 = vshll.u32 %v5953_v42, 16  ;;  %v4436_v54 = vor.u32 %v4435_v10, %v4432_v3  ;;  %v5999_v3 = vld [vmem:[%s6999_s23 + $0x34] sm:$0xf] }
  0xed   : > { %v4446_v40 = vor.u32 %v4445_v17, %v4441_v13  ;;  %v4451_v48 = vrot.slane %v4449_v33, 5  ;;  %v4463_v18 = vshll.u32 %v5954_v5, 16  ;;  %6353 = vmatmul.mubr.msk.bf16.gmra.mrb[4].mxu1 %vm259_vm1, %v6926_v28  ;;  %v4456_v37 = vrot.slane %v4454_v36, 4  ;;  %v6000_v33 = vld [vmem:[%s6999_s23 + $0x38] sm:$0x1] }
  0xee   : > { %v4428_v46 = vsel %vm7046_vm4, %v4423_v30, %v4427_v1  ;;  %v4459_v2 = vrot.slane %v4457_v41, 5  ;;  %v4467_v25 = vshrl.u32 %v5954_v5, 16  ;;  %6356 = vmatprep.mubr.msk.bf16.mxu1 %vm259_vm1, %v6927_v60  ;;  %v4437_v63 = vrot.slane %v4436_v54, 4  ;;  %v6001_v36 = vld [vmem:[%s6999_s23 + $0x3c] sm:$0xe]  ;;  %v6930_v41 = vld [vmem:[%s6999_s23 + $0x60] sm:$0xff]  }
  0xef   : > { %v5972_v59 = vcombine.low %v4418_v52, %v4428_v46  ;;  %v4447_v11 = vrot.slane %v4446_v40, 4  ;;  %v4465_v56 = vrot.slane %v4463_v18, 5  ;;  %v4473_v21 = vshll.u32 %v5955_v9, 16  ;;  %v6931_v46 = vld [vmem:[%s6999_s23 + $0x6c] sm:$0xff]  }
  0xf0   : > { %v4460_v34 = vor.u32 %v4459_v2, %v4456_v37  ;;  %v4469_v44 = vrot.slane %v4467_v25, 4  ;;  %v4478_v16 = vshrl.u32 %v5956_v35, 16  ;;  %v4442_v27 = vsel %vm7046_vm4, %v4437_v63, %v4441_v13 }
  0xf1   : > { %6505 = vmatmul.mubr.msk.bf16.gmra.mrb[20].mxu0 %vm259_vm1, %v5971_v53  ;;  %v4452_v24 = vsel %vm7046_vm4, %v4447_v11, %v4451_v48  ;;  %v4481_v19 = vshll.u32 %v5956_v35, 16  ;;  %v4487_v26 = vshll.u32 %v5957_v29, 16  ;;  %v4475_v23 = vrot.slane %v4473_v21, 5  ;;  %v6002_v35 = vld [vmem:[%s6999_s23 + $0x40] sm:$0xf] }
  0xf2   : > { %6508 = vmatprep.mubr.msk.bf16.mxu0 %vm259_vm1, %v5972_v59  ;;  %v4461_v38 = vrot.slane %v4460_v34, 4  ;;  %v4470_v39 = vor.u32 %v4469_v44, %v4465_v56  ;;  %v4480_v47 = vrot.slane %v4478_v16, 4  ;;  %v4491_v28 = vshrl.u32 %v5957_v29, 16  ;;  %v6004_v29 = vld [vmem:[%s6999_s23 + $0x48] sm:$0xe] }
  0xf3   : > { %v4483_v49 = vrot.slane %v4481_v19, 5  ;;  %v4489_v12 = vrot.slane %v4487_v26, 5  ;;  %v5973_v8 = vcombine.low %v4442_v27, %v4452_v24  ;;  %v4497_v57 = vshll.u32 %v5958_v20, 16  ;;  %v6005_v59 = vld [vmem:[%s6999_s23 + $0x4c] sm:$0xf] }
  0xf4   : > { %v4466_v32 = vsel %vm7046_vm4, %v4461_v38, %v4465_v56  ;;  %v4471_v55 = vrot.slane %v4470_v39, 4  ;;  %v4493_v4 = vrot.slane %v4491_v28, 4  ;;  %v6040_v1 = vrot.slane %v5992_v22, 9  ;;  %v6003_v20 = vld [vmem:[%s6999_s23 + $0x44] sm:$0x1] }
  0xf5   : > { %v4484_v60 = vor.u32 %v4483_v49, %v4480_v47  ;;  %v4957_v61 = vrot.slane %v5993_v51, 5  ;;  %6357 = vmatmul.mubr.msk.bf16.gmra.mrb[8].mxu1 %vm259_vm1, %v6928_v7  ;;  %v4499_v53 = vrot.slane %v4497_v57, 5  ;;  %v4960_v62 = vrot.slane %v5994_v50, 5  ;;  %v6006_v7 = vld [vmem:[%s6999_s23 + $0x50] sm:$0x1] }
  0xf6   : > { %v4476_v42 = vsel %vm7046_vm4, %v4471_v55, %v4475_v23  ;;  %v4964_v15 = vrot.slane %v5996_v6, 5  ;;  %6360 = vmatprep.mubr.msk.bf16.mxu1 %vm259_vm1, %v6929_v31  ;;  %v4494_v13 = vor.u32 %v4493_v4, %v4489_v12  ;;  %v6041_v17 = vrot.slane %v5995_v45, 9  ;;  %v6007_v34 = vld [vmem:[%s6999_s23 + $0x54] sm:$0xe]  ;;  %v6008_v51 = vld [vmem:[%s6999_s23 + $0x58] sm:$0xf] }
  0xf7   : > { %v5974_v5 = vcombine.low %v4466_v32, %v4476_v42  ;;  %v4485_v10 = vrot.slane %v4484_v60, 4  ;;  %v4959_v9 = vrot.slane %v4957_v61, 4  ;;  %v4967_v30 = vrot.slane %v5997_v58, 5  ;;  %v6009_v26 = vld [vmem:[%s6999_s23 + $0x5c] sm:$0x1] }
  0xf8   : > { %v4966_v52 = vrot.slane %v4964_v15, 4  ;;  %v4495_v54 = vrot.slane %v4494_v13, 4  ;;  %v4958_v40 = vsel %vm7121_vm7, %v6040_v1, %v4957_v61  ;;  %v6042_v48 = vrot.slane %v5998_v14, 9  ;;  %v5692_v50 = vld [vmem:[%s6999_s23 + $0x6c] sm:$0xf]  ;;  %v6932_v42 = vld [vmem:[%s6999_s23 + $0x78] sm:$0xff]  }
  0xf9   : > { %6509 = vmatmul.mubr.msk.bf16.gmra.mrb[24].mxu0 %vm259_vm1, %v5973_v8  ;;  %v4971_v18 = vrot.slane %v5999_v3, 5  ;;  %v4490_v37 = vsel %vm7046_vm4, %v4485_v10, %v4489_v12  ;;  %v4961_v2 = vsel %vm7121_vm7, %v4959_v9, %v4960_v62  ;;  %v4974_v25 = vrot.slane %v6000_v33, 5  ;;  %v5693_v45 = vld [vmem:[%s6999_s23 + $0x70] sm:$0xf]  ;;  %v5694_v55 = vld [vmem:[%s6999_s23 + $0x74] sm:$0x1] }
  0xfa   : > { %6512 = vmatprep.mubr.msk.bf16.mxu0 %vm259_vm1, %v5974_v5  ;;  %v4500_v63 = vsel %vm7046_vm4, %v4495_v54, %v4499_v53  ;;  %v7929_v11 = vsel %vm7121_vm7, %v6041_v17, %v4964_v15  ;;  %v7933_v56 = vsel %vm7121_vm7, %v4966_v52, %v4967_v30  ;;  %v6057_v44 = vcombine.low %v4958_v40, %v4961_v2  ;;  %v5695_v58 = vld [vmem:[%s6999_s23 + $0x78] sm:$0xf]  ;;  %v5696_v14 = vld [vmem:[%s6999_s23 + $0x7c] sm:$0xf]  ;;  %v6933_v5 = vld [vmem:[%s6999_s23 + $0x84] sm:$0xff]  }
  0xfb   : > { %v4973_v21 = vrot.slane %v4971_v18, 4  ;;  %v6043_v16 = vrot.slane %v6001_v36, 9  ;;  %v4978_v22 = vrot.slane %v6002_v35, 5  ;;  %v5975_v31 = vcombine.low %v4490_v37, %v4500_v63  ;;  %v5697_v52 = vld [vmem:[%s6999_s23 + $0x80] sm:$0x1] }
  0xfc   : > { %v7941_v27 = vsel %vm7121_vm7, %v6042_v48, %v4971_v18  ;;  %v6044_v24 = vrot.slane %v6004_v29, 9  ;;  %v4985_v19 = vrot.slane %v6005_v59, 5  ;;  %v4981_v39 = vrot.slane %v6003_v20, 5  ;;  %v6010_v35 = vld [vmem:[%s6999_s23 + $0x60] sm:$0xe] }
  0xfd   : > { %6361 = vmatmul.mubr.msk.bf16.gmra.mrb[12].mxu1 %vm259_vm1, %v6930_v41  ;;  %v7948_v6 = vsel %vm7121_vm7, %v4973_v21, %v4974_v25  ;;  %v4980_v38 = vrot.slane %v4978_v22, 4  ;;  %v6045_v23 = vrot.slane %v6007_v34, 9  ;;  %v6058_v47 = vcombine.low %v7929_v11, %v7933_v56  ;;  %v6014_v59 = vld [vmem:[%s6999_s23 + $0x70] sm:$0xf]  ;;  %v6012_v21 = vld [vmem:[%s6999_s23 + $0x68] sm:$0x1] }
  0xfe   : > { %6364 = vmatprep.mubr.msk.bf16.mxu1 %vm259_vm1, %v6931_v46  ;;  %v4988_v49 = vrot.slane %v6006_v7, 5  ;;  %v4992_v12 = vrot.slane %v6008_v51, 5  ;;  %v6059_v28 = vcombine.low %v7941_v27, %v7948_v6  ;;  %v7958_v8 = vsel %vm7121_vm7, %v6043_v16, %v4978_v22  ;;  %v6011_v46 = vld [vmem:[%s6999_s23 + $0x64] sm:$0xf]  ;;  %v6013_v7 = vld [vmem:[%s6999_s23 + $0x6c] sm:$0xe] }
  0xff   : > { %v7962_v32 = vsel %vm7121_vm7, %v6044_v24, %v4985_v19  ;;  %v2531_v57 = vshrl.u32 %v5692_v50, 16  ;;  %v4987_v60 = vrot.slane %v4985_v19, 4  ;;  %v4995_v4 = vrot.slane %v6009_v26, 5  ;;  %v6934_v51 = vld [vmem:[%s6999_s23 + $0x90] sm:$0xff]   ;;  %v5698_v26 = vld [vmem:[%s6999_s23 + $0x84] sm:$0xf] }
 0x100   : > { %v2534_v1 = vshll.u32 %v5692_v50, 16  ;;  %v2540_v61 = vshll.u32 %v5693_v45, 16  ;;  %v7972_v53 = vsel %vm7121_vm7, %v4980_v38, %v4981_v39  ;;  %v7976_v62 = vsel %vm7121_vm7, %v6045_v23, %v4992_v12  ;;  %v6015_v39 = vld [vmem:[%s6999_s23 + $0x74] sm:$0x1] }
 0x101   : > { %6513 = vmatmul.mubr.msk.bf16.gmra.mrb[28].mxu0 %vm259_vm1, %v5975_v31  ;;  %v2533_v15 = vrot.slane %v2531_v57, 4  ;;  %v2544_v3 = vshrl.u32 %v5693_v45, 16  ;;  %v4994_v10 = vrot.slane %v4992_v12, 4  ;;  %v2550_v33 = vshll.u32 %v5694_v55, 16  ;;  %v5699_v45 = vld [vmem:[%s6999_s23 + $0x88] sm:$0xf] }
 0x102   : > { %6518 = vmatprep.mubr.msk.bf16.mxu0 %vm259_vm1, %v6057_v44  ;;  %v2536_v13 = vrot.slane %v2534_v1, 5  ;;  %v2542_v17 = vrot.slane %v2540_v61, 5  ;;  %v2555_v30 = vshrl.u32 %v5695_v58, 16  ;;  %v2558_v36 = vshll.u32 %v5695_v58, 16  ;;  %v5700_v58 = vld [vmem:[%s6999_s23 + $0x8c] sm:$0x1] }
 0x103   : > { %v2546_v9 = vrot.slane %v2544_v3, 4  ;;  %v2564_v41 = vshll.u32 %v5696_v14, 16  ;;  %v7982_v54 = vsel %vm7121_vm7, %v4987_v60, %v4988_v49  ;;  %v2552_v48 = vrot.slane %v2550_v33, 5 }
 0x104   : > { %v2537_v40 = vor.u32 %v2536_v13, %v2533_v15  ;;  %v2568_v18 = vshrl.u32 %v5696_v14, 16  ;;  %v2557_v2 = vrot.slane %v2555_v30, 4  ;;  %v2560_v25 = vrot.slane %v2558_v36, 5  ;;  %v5703_v13 = vld [vmem:[%s6999_s23 + $0x98] sm:$0x1] }
 0x105   : > { %6365 = vmatmul.mubr.msk.bf16.gmra.mrb[16].mxu1 %vm259_vm1, %v6932_v42  ;;  %v2547_v37 = vor.u32 %v2546_v9, %v2542_v17  ;;  %v7987_v29 = vrot.slane %v2564_v41, 5  ;;  %v7993_v63 = vsel %vm7121_vm7, %v4994_v10, %v4995_v4  ;;  %v2574_v20 = vshll.u32 %v5697_v52, 16  ;;  %v5701_v4 = vld [vmem:[%s6999_s23 + $0x90] sm:$0xf]  ;;  %v6016_v30 = vld [vmem:[%s6999_s23 + $0x78] sm:$0xe] }
 0x106   : > { %6368 = vmatprep.mubr.msk.bf16.mxu1 %vm259_vm1, %v6933_v5  ;;  %v2538_v11 = vrot.slane %v2537_v40, 4  ;;  %v2570_v56 = vrot.slane %v2568_v18, 4  ;;  %v2561_v44 = vor.u32 %v2560_v25, %v2557_v2  ;;  %v6046_v16 = vrot.slane %v6010_v35, 9  ;;  %v6018_v2 = vld [vmem:[%s6999_s23 + $0x80] sm:$0x1] }
 0x107   : > { %v2548_v34 = vrot.slane %v2547_v37, 4  ;;  %v4999_v22 = vrot.slane %v6011_v46, 5  ;;  %v6060_v31 = vcombine.low %v7958_v8, %v7972_v53  ;;  %v5006_v19 = vrot.slane %v6014_v59, 5  ;;  %v5702_v53 = vld [vmem:[%s6999_s23 + $0x94] sm:$0xf]  ;;  %v6936_v59 = vld [vmem:[%s6999_s23 + $0xa8] sm:$0xff]  }
 0x108   : > { %v2543_v27 = vsel %vm7046_vm4, %v2538_v11, %v2542_v17  ;;  %v2571_v24 = vor.u32 %v2570_v56, %v7987_v29  ;;  %v6061_v50 = vcombine.low %v7962_v32, %v7982_v54  ;;  %v8010_v38 = vrot.slane %v2561_v44, 4  ;;  %v6019_v25 = vld [vmem:[%s6999_s23 + $0x84] sm:$0xe]  ;;  %v6937_v44 = vld [vmem:[%s6999_s23 + $0xb4] sm:$0xff]  }
 0x109   : > { %6519 = vmatmul.mubr.msk.bf16.vlgmr.msra.gmra.mrb[0].mxu0 %vm259_vm1, %v6058_v47  ;;  %v2553_v6 = vsel %vm7046_vm4, %v2548_v34, %v2552_v48  ;;  %v6047_v23 = vrot.slane %v6013_v7, 9  ;;  %v6935_v47 = vld [vmem:[%s6999_s23 + $0x9c] sm:$0xff]   ;;  %v6062_v49 = vcombine.low %v7976_v62, %v7993_v63  ;;  %v8017_v12 = vrot.slane %v2574_v20, 5  ;;  %v6020_v34 = vld [vmem:[%s6999_s23 + $0x88] sm:$0xf] }
 0x10a   : > { %6522 = vmatprep.mubr.msk.bf16.mxu0 %vm259_vm1, %v6059_v28  ;;  %v5001_v28 = vrot.slane %v4999_v22, 4  ;;  %v5002_v8 = vrot.slane %v6012_v21, 5  ;;  %v8019_v55 = vcombine.low %v2543_v27, %v2553_v6  ;;  %v8021_v32 = vrot.slane %v2571_v24, 4  ;;  %v6017_v48 = vld [vmem:[%s6999_s23 + $0x7c] sm:$0xf] }
 0x10b   : > { %v8025_v57 = vsel %vm7121_vm7, %v6046_v16, %v4999_v22  ;;  %v2579_v60 = vshrl.u32 %v5698_v26, 16  ;;  %v5008_v1 = vrot.slane %v5006_v19, 4  ;;  %v5009_v61 = vrot.slane %v6015_v39, 5  ;;  %v6021_v6 = vld [vmem:[%s6999_s23 + $0x8c] sm:$0x1] }
 0x10c   : > { %v2582_v14 = vshll.u32 %v5698_v26, 16  ;;  %v2588_v42 = vshll.u32 %v5699_v45, 16  ;;  %v2567_v15 = vsel %vm7046_vm4, %v8010_v38, %v7987_v29  ;;  %v8037_v3 = vsel %vm7121_vm7, %v6047_v23, %v5006_v19 }
 0x10d   : > { %6369 = vmatmul.mubr.msk.bf16.gmra.mrb[20].mxu1 %vm259_vm1, %v6934_v51  ;;  %v2581_v5 = vrot.slane %v2579_v60, 4  ;;  %v2592_v10 = vshrl.u32 %v5699_v45, 16  ;;  %v8043_v17 = vsel %vm7121_vm7, %v5001_v28, %v5002_v8  ;;  %v2598_v52 = vshll.u32 %v5700_v58, 16  ;;  %v5704_v45 = vld [vmem:[%s6999_s23 + $0x9c] sm:$0xf] }
 0x10e   : > { %6372 = vmatprep.mubr.msk.bf16.mxu1 %vm259_vm1, %v6935_v47  ;;  %v2584_v33 = vrot.slane %v2582_v14, 5  ;;  %v8045_v9 = vrot.slane %v2588_v42, 5  ;;  %v2603_v41 = vshrl.u32 %v5701_v4, 16  ;;  %v2606_v54 = vshll.u32 %v5701_v4, 16  ;;  %v5705_v60 = vld [vmem:[%s6999_s23 + $0xa0] sm:$0xf] }
 0x10f   : > { %v2594_v36 = vrot.slane %v2592_v10, 4  ;;  %v2612_v40 = vshll.u32 %v5702_v53, 16  ;;  %v8052_v18 = vsel %vm7121_vm7, %v5008_v1, %v5009_v61  ;;  %v2616_v46 = vshrl.u32 %v5702_v53, 16  ;;  %v5707_v10 = vld [vmem:[%s6999_s23 + $0xa8] sm:$0xf] }
 0x110   : > { %v2585_v35 = vor.u32 %v2584_v33, %v2581_v5  ;;  %v2622_v37 = vshll.u32 %v5703_v13, 16  ;;  %v2605_v56 = vrot.slane %v2603_v41, 4  ;;  %v2608_v20 = vrot.slane %v2606_v54, 5 }
 0x111   : > { %6523 = vmatmul.mubr.msk.bf16.gmra.mrb[4].mxu0 %vm259_vm1, %v6060_v31  ;;  %v2595_v11 = vor.u32 %v2594_v36, %v8045_v9  ;;  %v8059_v7 = vrot.slane %v2612_v40, 5  ;;  %v8065_v16 = vrot.slane %v2598_v52, 5  ;;  %v2618_v22 = vrot.slane %v2616_v46, 4  ;;  %v5708_v52 = vld [vmem:[%s6999_s23 + $0xac] sm:$0xf] }
 0x112   : > { %6526 = vmatprep.mubr.msk.bf16.mxu0 %vm259_vm1, %v6061_v50  ;;  %v8063_v21 = vrot.slane %v2585_v35, 4  ;;  %v6048_v51 = vrot.slane %v6016_v30, 9  ;;  %v2609_v27 = vor.u32 %v2608_v20, %v2605_v56  ;;  %v5013_v24 = vrot.slane %v6017_v48, 5  ;;  %v6938_v30 = vld [vmem:[%s6999_s23 + $0xc0] sm:$0xff]  }
 0x113   : > { %v8067_v31 = vrot.slane %v2595_v11, 4  ;;  %v5016_v19 = vrot.slane %v6018_v2, 5  ;;  %v2577_v26 = vsel %vm7046_vm4, %v8021_v32, %v8017_v12  ;;  %v2619_v50 = vor.u32 %v2618_v22, %v8059_v7  ;;  %v5711_v32 = vld [vmem:[%s6999_s23 + $0xb8] sm:$0xf] }
 0x114   : > { %v6049_v39 = vrot.slane %v6019_v25, 9  ;;  %v5020_v23 = vrot.slane %v6020_v34, 5  ;;  %v6063_v47 = vcombine.low %v8025_v57, %v8043_v17  ;;  %v8079_v28 = vrot.slane %v2609_v27, 4  ;;  %v6022_v25 = vld [vmem:[%s6999_s23 + $0x90] sm:$0xe] }
 0x115   : > { %6373 = vmatmul.mubr.msk.bf16.gmra.mrb[24].mxu1 %vm259_vm1, %v6936_v59  ;;  %v8081_v8 = vrot.slane %v2622_v37, 5  ;;  %v5015_v58 = vrot.slane %v5013_v24, 4  ;;  %v6064_v4 = vcombine.low %v8037_v3, %v8052_v18  ;;  %v2591_v1 = vsel %vm7046_vm4, %v8063_v21, %v8045_v9  ;;  %v5706_v3 = vld [vmem:[%s6999_s23 + $0xa4] sm:$0x1]  ;;  %v5709_v18 = vld [vmem:[%s6999_s23 + $0xb0] sm:$0x1] }
 0x116   : > { %6376 = vmatprep.mubr.msk.bf16.mxu1 %vm259_vm1, %v6937_v44  ;;  %v2601_v57 = vsel %vm7046_vm4, %v8067_v31, %v8065_v16  ;;  %v2620_v61 = vrot.slane %v2619_v50, 4  ;;  %v5014_v14 = vsel %vm7121_vm7, %v6048_v51, %v5013_v24  ;;  %v8101_v53 = vsel %vm7121_vm7, %v6049_v39, %v5020_v23  ;;  %v6024_v34 = vld [vmem:[%s6999_s23 + $0x98] sm:$0x1]  ;;  %v6026_v51 = vld [vmem:[%s6999_s23 + $0xa0] sm:$0xf] }
 0x117   : > { %v5017_v42 = vsel %vm7121_vm7, %v5015_v58, %v5016_v19  ;;  %v2627_v5 = vshrl.u32 %v5704_v45, 16  ;;  %v5022_v13 = vrot.slane %v5020_v23, 4  ;;  %v5023_v17 = vrot.slane %v6021_v6, 5  ;;  %v5710_v58 = vld [vmem:[%s6999_s23 + $0xb4] sm:$0xf] }
 0x118   : > { %v2630_v33 = vshll.u32 %v5704_v45, 16  ;;  %v2636_v9 = vshll.u32 %v5705_v60, 16  ;;  %v2615_v36 = vsel %vm7046_vm4, %v8079_v28, %v8059_v7  ;;  %v2625_v62 = vsel %vm7046_vm4, %v2620_v61, %v8081_v8  ;;  %v6023_v7 = vld [vmem:[%s6999_s23 + $0x94] sm:$0xf]  ;;  %v6025_v45 = vld [vmem:[%s6999_s23 + $0x9c] sm:$0xe] }
 0x119   : > { %6527 = vmatmul.mubr.msk.bf16.gmra.mrb[8].mxu0 %vm259_vm1, %v6062_v49  ;;  %v2629_v63 = vrot.slane %v2627_v5, 4  ;;  %v2640_v49 = vshrl.u32 %v5705_v60, 16  ;;  %v6065_v41 = vcombine.low %v5014_v14, %v5017_v42  ;;  %v2646_v48 = vshll.u32 %v5706_v3, 16  ;;  %v5712_v3 = vld [vmem:[%s6999_s23 + $0xbc] sm:$0x1] }
 0x11a   : > { %6530 = vmatprep.mubr.msk.bf16.mxu0 %vm259_vm1, %v6063_v47  ;;  %v2632_v54 = vrot.slane %v2630_v33, 5  ;;  %v2638_v40 = vrot.slane %v2636_v9, 5  ;;  %v2651_v46 = vshrl.u32 %v5707_v10, 16  ;;  %v2654_v37 = vshll.u32 %v5707_v10, 16  ;;  %v5713_v10 = vld [vmem:[%s6999_s23 + $0xc0] sm:$0xf] }
 0x11b   : > { %v2642_v35 = vrot.slane %v2640_v49, 4  ;;  %v2660_v2 = vshll.u32 %v5708_v52, 16  ;;  %v8123_v59 = vsel %vm7121_vm7, %v5022_v13, %v5023_v17  ;;  %v2648_v56 = vrot.slane %v2646_v48, 5 }
 0x11c   : > { %v2633_v11 = vor.u32 %v2632_v54, %v2629_v63  ;;  %v2664_v20 = vshrl.u32 %v5708_v52, 16  ;;  %v2653_v21 = vrot.slane %v2651_v46, 4  ;;  %v2656_v16 = vrot.slane %v2654_v37, 5  ;;  %v6028_v46 = vld [vmem:[%s6999_s23 + $0xa8] sm:$0xe] }
 0x11d   : > { %6377 = vmatmul.mubr.msk.bf16.gmra.mrb[28].mxu1 %vm259_vm1, %v6938_v30  ;;  %v2643_v44 = vor.u32 %v2642_v35, %v2638_v40  ;;  %v8128_v22 = vrot.slane %v2660_v2, 5  ;;  %v2670_v24 = vshll.u32 %v5709_v18, 16  ;;  %v6050_v19 = vrot.slane %v6022_v25, 9 }
 0x11e   : > { %6398 = vmatprep.mubr.msk.bf16.mxu1 %vm259_vm1, %v8019_v55  ;;  %v2634_v31 = vrot.slane %v2633_v11, 4  ;;  %v2666_v27 = vrot.slane %v2664_v20, 4  ;;  %v2657_v6 = vor.u32 %v2656_v16, %v2653_v21  ;;  %v5027_v39 = vrot.slane %v6023_v7, 5  ;;  %v6029_v11 = vld [vmem:[%s6999_s23 + $0xac] sm:$0xf] }
 0x11f   : > { %v2644_v50 = vrot.slane %v2643_v44, 4  ;;  %v5030_v23 = vrot.slane %v6024_v34, 5  ;;  %v5726_v55 = vcombine.low %v2567_v15, %v2577_v26  ;;  %v5034_v8 = vrot.slane %v6026_v51, 5  ;;  %v5715_v34 = vld [vmem:[%s6999_s23 + $0xc8] sm:$0x1] }
 0x120   : > { %v2639_v47 = vsel %vm7046_vm4, %v2634_v31, %v2638_v40  ;;  %v2667_v28 = vor.u32 %v2666_v27, %v8128_v22  ;;  %v5727_v60 = vcombine.low %v2591_v1, %v2601_v57  ;;  %v8149_v12 = vcombine.low %v2615_v36, %v2625_v62  ;;  %v6027_v1 = vld [vmem:[%s6999_s23 + $0xa4] sm:$0x1]  ;;  %v6032_v16 = vld [vmem:[%s6999_s23 + $0xb8] sm:$0xf] }
 0x121   : > { %6531 = vmatmul.mubr.msk.bf16.gmra.mrb[12].mxu0 %vm259_vm1, %v6064_v4  ;;  %v2649_v29 = vsel %vm7046_vm4, %v2644_v50, %v2648_v56  ;;  %v5029_v38 = vrot.slane %v5027_v39, 4  ;;  %v6066_v15 = vcombine.low %v8101_v53, %v8123_v59  ;;  %v8157_v26 = vrot.slane %v2670_v24, 5  ;;  %v5714_v53 = vld [vmem:[%s6999_s23 + $0xc4] sm:$0xf]  ;;  %v6030_v56 = vld [vmem:[%s6999_s23 + $0xb0] sm:$0x1] }
 0x122   : > { %6534 = vmatprep.mubr.msk.bf16.mxu0 %vm259_vm1, %v6065_v41  ;;  %v5028_v4 = vsel %vm7121_vm7, %v6050_v19, %v5027_v39  ;;  %v6051_v57 = vrot.slane %v6025_v45, 9  ;;  %v5729_v61 = vcombine.low %v2639_v47, %v2649_v29  ;;  %v2658_v14 = vrot.slane %v2657_v6, 4  ;;  %v6031_v24 = vld [vmem:[%s6999_s23 + $0xb4] sm:$0xe] }
 0x123   : > { %v5031_v42 = vsel %vm7121_vm7, %v5029_v38, %v5030_v23  ;;  %v2675_v5 = vshrl.u32 %v5710_v58, 16  ;;  %v2668_v13 = vrot.slane %v2667_v28, 4  ;;  %v5036_v17 = vrot.slane %v5034_v8, 4  ;;  %v6034_v28 = vld [vmem:[%s6999_s23 + $0xc0] sm:$0xe] }
 0x124   : > { %v2678_v33 = vshll.u32 %v5710_v58, 16  ;;  %v2684_v9 = vshll.u32 %v5711_v32, 16  ;;  %v6067_v52 = vcombine.low %v5028_v4, %v5031_v42  ;;  %v5037_v30 = vrot.slane %v6027_v1, 5  ;;  %v6035_v38 = vld [vmem:[%s6999_s23 + $0xc4] sm:$0xf] }
 0x125   : > { %6399 = vmatmul.mubr.msk.bf16.vlgmr.msra.gmra.mrb[16].mxu1 %vm259_vm1, %v5726_v55  ;;  %v2677_v36 = vrot.slane %v2675_v5, 4  ;;  %v2688_v62 = vshrl.u32 %v5711_v32, 16  ;;  %v5035_v63 = vsel %vm7121_vm7, %v6051_v57, %v5034_v8  ;;  %v2694_v54 = vshll.u32 %v5712_v3, 16  ;;  %v6033_v55 = vld [vmem:[%s6999_s23 + $0xbc] sm:$0x1] }
 0x126   : > { %6402 = vmatprep.mubr.msk.bf16.mxu1 %vm259_vm1, %v5727_v60  ;;  %v2680_v49 = vrot.slane %v2678_v33, 5  ;;  %v2686_v41 = vrot.slane %v2684_v9, 5  ;;  %v2699_v48 = vshrl.u32 %v5713_v10, 16  ;;  %v2702_v18 = vshll.u32 %v5713_v10, 16  ;;  %v6036_v32 = vld [vmem:[%s6999_s23 + $0xc8] sm:$0x1] }
 0x127   : > { %v2690_v40 = vrot.slane %v2688_v62, 4  ;;  %v2708_v35 = vshll.u32 %v5714_v53, 16  ;;  %v2663_v37 = vsel %vm7046_vm4, %v2658_v14, %v8128_v22  ;;  %v2673_v2 = vsel %vm7046_vm4, %v2668_v13, %v8157_v26  ;;  %v6038_v57 = vld [vmem:[%s6999_s23 + $0xd0] sm:$0xf] }
 0x128   : > { %v2681_v25 = vor.u32 %v2680_v49, %v2677_v36  ;;  %v2712_v59 = vshrl.u32 %v5714_v53, 16  ;;  %v5038_v20 = vsel %vm7121_vm7, %v5036_v17, %v5037_v30  ;;  %v2701_v44 = vrot.slane %v2699_v48, 4  ;;  %v6039_v49 = vld [vmem:[%s6999_s23 + $0xd4] sm:$0x1] }
 0x129   : > { %6535 = vmatmul.mubr.msk.bf16.gmra.mrb[16].mxu0 %vm259_vm1, %v6066_v15  ;;  %v2691_v7 = vor.u32 %v2690_v40, %v2686_v41  ;;  %v2704_v21 = vrot.slane %v2702_v18, 5  ;;  %v2710_v51 = vrot.slane %v2708_v35, 5  ;;  %v6052_v27 = vrot.slane %v6028_v46, 9 }
 0x12a   : > { %6538 = vmatprep.mubr.msk.bf16.mxu0 %vm259_vm1, %v6067_v52  ;;  %v2682_v22 = vrot.slane %v2681_v25, 4  ;;  %v2714_v31 = vrot.slane %v2712_v59, 4  ;;  %v2696_v50 = vrot.slane %v2694_v54, 5  ;;  %v5041_v6 = vrot.slane %v6029_v11, 5 }
 0x12b   : > { %v2692_v19 = vrot.slane %v2691_v7, 4  ;;  %v5044_v39 = vrot.slane %v6030_v56, 5  ;;  %v6068_v23 = vcombine.low %v5035_v63, %v5038_v20  ;;  %v2718_v45 = vshll.u32 %v5715_v34, 16  ;;  %v6037_v63 = vld [vmem:[%s6999_s23 + $0xcc] sm:$0xe] }
 0x12c   : > { %v5048_v47 = vrot.slane %v6032_v16, 5  ;;  %v2705_v8 = vor.u32 %v2704_v21, %v2701_v44  ;;  %v5042_v58 = vsel %vm7121_vm7, %v6052_v27, %v5041_v6  ;;  %v5043_v60 = vrot.slane %v5041_v6, 4 }
 0x12d   : > { %6403 = vmatmul.mubr.msk.bf16.gmra.mrb[20].mxu1 %vm259_vm1, %v8149_v12  ;;  %v6053_v29 = vrot.slane %v6031_v24, 9  ;;  %v5730_v15 = vcombine.low %v2663_v37, %v2673_v2  ;;  %v2687_v26 = vsel %vm7046_vm4, %v2682_v22, %v2686_v41  ;;  %v2715_v4 = vor.u32 %v2714_v31, %v2710_v51 }
 0x12e   : > { %6406 = vmatprep.mubr.msk.bf16.mxu1 %vm259_vm1, %v5729_v61  ;;  %v5050_v1 = vrot.slane %v5048_v47, 4  ;;  %v2697_v12 = vsel %vm7046_vm4, %v2692_v19, %v2696_v50  ;;  %v5045_v14 = vsel %vm7121_vm7, %v5043_v60, %v5044_v39  ;;  %v5051_v42 = vrot.slane %v6033_v55, 5 }
 0x12f   : > { %v6054_v3 = vrot.slane %v6034_v28, 9  ;;  %v2720_v61 = vrot.slane %v2718_v45, 5  ;;  %v6069_v5 = vcombine.low %v5042_v58, %v5045_v14  ;;  %v5055_v10 = vrot.slane %v6035_v38, 5 }
 0x130   : > { %v5058_v13 = vrot.slane %v6036_v32, 5  ;;  %v2706_v17 = vrot.slane %v2705_v8, 4  ;;  %v5049_v33 = vsel %vm7121_vm7, %v6053_v29, %v5048_v47  ;;  %v5052_v9 = vsel %vm7121_vm7, %v5050_v1, %v5051_v42 }
 0x131   : > { %6539 = vmatmul.mubr.msk.bf16.gmra.mrb[20].mxu0 %vm259_vm1, %v6068_v23  ;;  %v5062_v53 = vrot.slane %v6038_v57, 5  ;;  %v5731_v52 = vcombine.low %v2687_v26, %v2697_v12  ;;  %v2716_v30 = vrot.slane %v2715_v4, 4  ;;  %v5056_v36 = vsel %vm7121_vm7, %v6054_v3, %v5055_v10 }
 0x132   : > { %6542 = vmatprep.mubr.msk.bf16.mxu0 %vm259_vm1, %v6069_v5  ;;  %v5057_v62 = vrot.slane %v5055_v10, 4  ;;  %v6070_v41 = vcombine.low %v5049_v33, %v5052_v9  ;;  %v6055_v48 = vrot.slane %v6037_v63, 9  ;;  %v5065_v35 = vrot.slane %v6039_v49, 5 }
 0x133   : > { %v5064_v18 = vrot.slane %v5062_v53, 4  ;;  %v2711_v46 = vsel %vm7046_vm4, %v2706_v17, %v2710_v51  ;;  %v2721_v37 = vsel %vm7046_vm4, %v2716_v30, %v2720_v61 }
 0x134   : > { %v5059_v54 = vsel %vm7121_vm7, %v5057_v62, %v5058_v13  ;;  %v5732_v2 = vcombine.low %v2711_v46, %v2721_v37  ;;  %v5063_v25 = vsel %vm7121_vm7, %v6055_v48, %v5062_v53 }
 0x135   : > { %6407 = vmatmul.mubr.msk.bf16.gmra.mrb[24].mxu1 %vm259_vm1, %v5730_v15  ;;  %v6071_v40 = vcombine.low %v5056_v36, %v5059_v54  ;;  %v5066_v59 = vsel %vm7121_vm7, %v5064_v18, %v5065_v35 }
 0x136   : > { %6410 = vmatprep.mubr.msk.bf16.mxu1 %vm259_vm1, %v5731_v52  ;;  %v6072_v11 = vcombine.low %v5063_v25, %v5066_v59 }
 0x139   : > { %6543 = vmatmul.mubr.msk.bf16.gmra.mrb[24].mxu0 %vm259_vm1, %v6070_v41 }
 0x13a   : > { %6546 = vmatprep.mubr.msk.bf16.mxu0 %vm259_vm1, %v6071_v40 }
 0x13d   : > { %6411 = vmatmul.mubr.msk.bf16.gmra.mrb[28].mxu1 %vm259_vm1, %v5732_v2 }
 0x141   : > { %6547 = vmatmul.mubr.msk.bf16.gmra.mrb[28].mxu0 %vm259_vm1, %v6072_v11 }
 0x1b8   : > { %v6350_v56 = vpop.f32.mrb[0].mxu1 }
 0x1b9   : > { %v2067_v43 = vpop.f32.mrb[1].mxu1 }
 0x1ba   : > { %v6351_v20 = vpop.f32.mrb[2].mxu1 }
 0x1bb   : > { %v2070_v7 = vpop.f32.mrb[3].mxu1 }
 0x1c0   : > { %v6354_v34 = vpop.f32.mrb[4].mxu1 }
 0x1c1   : > { %v2083_v44 = vpop.f32.mrb[5].mxu1 }
 0x1c2   : > { %v6355_v21 = vpop.f32.mrb[6].mxu1 }
 0x1c3   : > { %v2086_v16 = vpop.f32.mrb[7].mxu1 }
 0x1c8   : > { %v6358_v22 = vpop.f32.mrb[8].mxu1 }
 0x1c9   : > { %v2099_v51 = vpop.f32.mrb[9].mxu1 }
 0x1ca   : > { %v6359_v31 = vpop.f32.mrb[10].mxu1 }
 0x1cb   : > { %v2102_v27 = vpop.f32.mrb[11].mxu1 }
 0x1d0   : > { %v6362_v0 = vpop.f32.mrb[12].mxu1 }
 0x1d1   : > { %v2115_v24 = vpop.f32.mrb[13].mxu1 }
 0x1d2   : > { %v6363_v19 = vpop.f32.mrb[14].mxu1 }
 0x1d3   : > { %v2118_v50 = vpop.f32.mrb[15].mxu1 }
 0x1dc   : > { %v6520_v6 = vpop.f32.mrb[0].mxu0 }
 0x1dd   : > { %v6554_v39 = vadd.f32 %v6520_v6, %v6350_v56  ;;  %v5202_v23 = vpop.f32.mrb[1].mxu0 }
 0x1de   : > { %v6557_v45 = vadd.f32 %v5202_v23, %v2067_v43  ;;  %v6521_v55 = vpop.f32.mrb[2].mxu0 }
 0x1df   : > { %5395 = vst [vmem:[%s8233_s14 + $0x10] sm:$0xff] %v6554_v39  ;;  %v6560_v47 = vadd.f32 %v6521_v55, %v6351_v20  ;;  %v5205_v28 = vpop.f32.mrb[3].mxu0 }
 0x1e0   : > { %5393 = vst [vmem:[%s8233_s14] sm:$0xff] %v6557_v45  ;;  %v6563_v8 = vadd.f32 %v5205_v28, %v2070_v7 }
 0x1e1   : > { %5396 = vst [vmem:[%s8233_s14 + $0x18] sm:$0xff] %v6560_v47 }
 0x1e2   : > { %5394 = vst [vmem:[%s8233_s14 + $0x8] sm:$0xff] %v6563_v8 }
 0x1e4   : > { %v6524_v58 = vpop.f32.mrb[4].mxu0 }
 0x1e5   : > { %v6566_v60 = vadd.f32 %v6524_v58, %v6354_v34  ;;  %v5218_v29 = vpop.f32.mrb[5].mxu0 }
 0x1e6   : > { %v6569_v38 = vadd.f32 %v5218_v29, %v2083_v44  ;;  %v6525_v32 = vpop.f32.mrb[6].mxu0 }
 0x1e7   : > { %5399 = vst [vmem:[%s8233_s14 + $0x30] sm:$0xff] %v6566_v60  ;;  %v6572_v15 = vadd.f32 %v6525_v32, %v6355_v21  ;;  %v5221_v26 = vpop.f32.mrb[7].mxu0 }
 0x1e8   : > { %5397 = vst [vmem:[%s8233_s14 + $0x20] sm:$0xff] %v6569_v38  ;;  %v6575_v4 = vadd.f32 %v5221_v26, %v2086_v16 }
 0x1e9   : > { %5400 = vst [vmem:[%s8233_s14 + $0x38] sm:$0xff] %v6572_v15 }
 0x1ea   : > { %5398 = vst [vmem:[%s8233_s14 + $0x28] sm:$0xff] %v6575_v4 }
 0x1ec   : > { %v6528_v1 = vpop.f32.mrb[8].mxu0 }
 0x1ed   : > { %v6578_v57 = vadd.f32 %v6528_v1, %v6358_v22  ;;  %v5234_v12 = vpop.f32.mrb[9].mxu0 }
 0x1ee   : > { %v6581_v14 = vadd.f32 %v5234_v12, %v2099_v51  ;;  %v6529_v42 = vpop.f32.mrb[10].mxu0 }
 0x1ef   : > { %5403 = vst [vmem:[%s8233_s14 + $0x50] sm:$0xff] %v6578_v57  ;;  %v6584_v3 = vadd.f32 %v6529_v42, %v6359_v31  ;;  %v5237_v61 = vpop.f32.mrb[11].mxu0 }
 0x1f0   : > { %5401 = vst [vmem:[%s8233_s14 + $0x40] sm:$0xff] %v6581_v14  ;;  %v6587_v5 = vadd.f32 %v5237_v61, %v2102_v27 }
 0x1f1   : > { %5404 = vst [vmem:[%s8233_s14 + $0x58] sm:$0xff] %v6584_v3 }
 0x1f2   : > { %5402 = vst [vmem:[%s8233_s14 + $0x48] sm:$0xff] %v6587_v5 }
 0x1f4   : > { %v6532_v10 = vpop.f32.mrb[12].mxu0 }
 0x1f5   : > { %v6590_v13 = vadd.f32 %v6532_v10, %v6362_v0  ;;  %v5250_v17 = vpop.f32.mrb[13].mxu0 }
 0x1f6   : > { %v6593_v33 = vadd.f32 %v5250_v17, %v2115_v24  ;;  %v6533_v9 = vpop.f32.mrb[14].mxu0 }
 0x1f7   : > { %5407 = vst [vmem:[%s8233_s14 + $0x70] sm:$0xff] %v6590_v13  ;;  %v6596_v53 = vadd.f32 %v6533_v9, %v6363_v19  ;;  %v5253_v52 = vpop.f32.mrb[15].mxu0 }
 0x1f8   : > { %5405 = vst [vmem:[%s8233_s14 + $0x60] sm:$0xff] %v6593_v33  ;;  %v6599_v30 = vadd.f32 %v5253_v52, %v2118_v50  ;;  %v6400_v36 = vpop.f32.mrb[16].mxu1 }
 0x1f9   : > { %5408 = vst [vmem:[%s8233_s14 + $0x78] sm:$0xff] %v6596_v53  ;;  %v2921_v62 = vpop.f32.mrb[17].mxu1 }
 0x1fa   : > { %5406 = vst [vmem:[%s8233_s14 + $0x68] sm:$0xff] %v6599_v30  ;;  %v6401_v63 = vpop.f32.mrb[18].mxu1 }
 0x1fb   : > { %v2924_v49 = vpop.f32.mrb[19].mxu1 }
 0x1fc   : > { %v6536_v41 = vpop.f32.mrb[16].mxu0 }
 0x1fd   : > { %v6602_v54 = vadd.f32 %v6536_v41, %v6400_v36  ;;  %v5266_v40 = vpop.f32.mrb[17].mxu0 }
 0x1fe   : > { %v6605_v48 = vadd.f32 %v5266_v40, %v2921_v62  ;;  %v6537_v18 = vpop.f32.mrb[18].mxu0 }
 0x1ff   : > { %5411 = vst [vmem:[%s8233_s14 + $0x90] sm:$0xff] %v6602_v54  ;;  %v6608_v35 = vadd.f32 %v6537_v18, %v6401_v63  ;;  %v5269_v46 = vpop.f32.mrb[19].mxu0 }
 0x200   : > { %5409 = vst [vmem:[%s8233_s14 + $0x80] sm:$0xff] %v6605_v48  ;;  %v6611_v37 = vadd.f32 %v5269_v46, %v2924_v49  ;;  %v6404_v2 = vpop.f32.mrb[20].mxu1 }
 0x201   : > { %5412 = vst [vmem:[%s8233_s14 + $0x98] sm:$0xff] %v6608_v35  ;;  %v2937_v25 = vpop.f32.mrb[21].mxu1 }
 0x202   : > { %5410 = vst [vmem:[%s8233_s14 + $0x88] sm:$0xff] %v6611_v37  ;;  %v6405_v59 = vpop.f32.mrb[22].mxu1 }
 0x203   : > { %v2940_v11 = vpop.f32.mrb[23].mxu1 }
 0x204   : > { %v6540_v56 = vpop.f32.mrb[20].mxu0 }
 0x205   : > { %v6614_v43 = vadd.f32 %v6540_v56, %v6404_v2  ;;  %v5282_v20 = vpop.f32.mrb[21].mxu0 }
 0x206   : > { %v6617_v7 = vadd.f32 %v5282_v20, %v2937_v25  ;;  %v6541_v34 = vpop.f32.mrb[22].mxu0 }
 0x207   : > { %5415 = vst [vmem:[%s8233_s14 + $0xb0] sm:$0xff] %v6614_v43  ;;  %v6620_v44 = vadd.f32 %v6541_v34, %v6405_v59  ;;  %v5285_v21 = vpop.f32.mrb[23].mxu0 }
 0x208   : > { %5413 = vst [vmem:[%s8233_s14 + $0xa0] sm:$0xff] %v6617_v7  ;;  %v6623_v16 = vadd.f32 %v5285_v21, %v2940_v11  ;;  %v6408_v22 = vpop.f32.mrb[24].mxu1 }
 0x209   : > { %5416 = vst [vmem:[%s8233_s14 + $0xb8] sm:$0xff] %v6620_v44  ;;  %v2953_v51 = vpop.f32.mrb[25].mxu1 }
 0x20a   : > { %5414 = vst [vmem:[%s8233_s14 + $0xa8] sm:$0xff] %v6623_v16  ;;  %v6409_v31 = vpop.f32.mrb[26].mxu1 }
 0x20b   : > { %v2956_v27 = vpop.f32.mrb[27].mxu1 }
 0x20c   : > { %v6544_v0 = vpop.f32.mrb[24].mxu0 }
 0x20d   : > { %v6626_v24 = vadd.f32 %v6544_v0, %v6408_v22  ;;  %v5298_v19 = vpop.f32.mrb[25].mxu0 }
 0x20e   : > { %v6629_v50 = vadd.f32 %v5298_v19, %v2953_v51  ;;  %v6545_v6 = vpop.f32.mrb[26].mxu0 }
 0x20f   : > { %5419 = vst [vmem:[%s8233_s14 + $0xd0] sm:$0xff] %v6626_v24  ;;  %v6632_v39 = vadd.f32 %v6545_v6, %v6409_v31  ;;  %v5301_v23 = vpop.f32.mrb[27].mxu0 }
 0x210   : > { %5417 = vst [vmem:[%s8233_s14 + $0xc0] sm:$0xff] %v6629_v50  ;;  %v6635_v45 = vadd.f32 %v5301_v23, %v2956_v27  ;;  %v6412_v55 = vpop.f32.mrb[28].mxu1 }
 0x211   : > { %5420 = vst [vmem:[%s8233_s14 + $0xd8] sm:$0xff] %v6632_v39  ;;  %v2969_v47 = vpop.f32.mrb[29].mxu1 }
 0x212   : > { %5418 = vst [vmem:[%s8233_s14 + $0xc8] sm:$0xff] %v6635_v45  ;;  %v6413_v28 = vpop.f32.mrb[30].mxu1 }
 0x213   : > { %v2972_v8 = vpop.f32.mrb[31].mxu1 }
 0x214   : > { %v6548_v58 = vpop.f32.mrb[28].mxu0 }
 0x215   : > { %v6638_v60 = vadd.f32 %v6548_v58, %v6412_v55  ;;  %v5314_v29 = vpop.f32.mrb[29].mxu0 }
 0x216   : > { %v6641_v38 = vadd.f32 %v5314_v29, %v2969_v47  ;;  %v6549_v32 = vpop.f32.mrb[30].mxu0 }
 0x217   : > { %5423 = vst [vmem:[%s8233_s14 + $0xf0] sm:$0xff] %v6638_v60  ;;  %v6644_v15 = vadd.f32 %v6549_v32, %v6413_v28  ;;  %v5317_v26 = vpop.f32.mrb[31].mxu0 }
 0x218   : > { %5421 = vst [vmem:[%s8233_s14 + $0xe0] sm:$0xff] %v6641_v38  ;;  %v6647_v4 = vadd.f32 %v5317_v26, %v2972_v8 }
 0x219   : > { %5424 = vst [vmem:[%s8233_s14 + $0xf8] sm:$0xff] %v6644_v15 }
 0x21a   : > { %5422 = vst [vmem:[%s8233_s14 + $0xe8] sm:$0xff] %v6647_v4 }
 0x21b PF: > { %s12_s9 = sadd.s32 1, %s6946_s9  }
 0x21c   : > { %p9_p5 = scmp.ge.s32.totalorder %s12_s9, 4  }
 0x21e   :  { %11 = sbr.rel (!%p9_p5) target bundleno = 1 (0x1), region = 68 }

</bundles_post_ra>
